<compile_context>
chip_gen: v7x
topology: tpu7x:2x2x1
jax: 0.10.0
libtpu: 0.0.40
codegen_flags: <defaults>
</compile_context>

<pallas_src>
import functools

import jax
import jax.numpy as jnp
from jax import lax
from jax.experimental import pallas as pl
from jax.experimental.pallas import tpu as pltpu

_LANE = 128
_SUBLANE = 8
_MIN_TILE_EDGES = 128                    # TE is always a multiple of 128 (lane dim)
_MAX_TILE_EDGES = 8192
_TILE_VMEM_BUDGET = 8 * 1024 * 1024      # streaming: 2 inputs x 2 buffers x TE x D x itemsize
_FUSED_MAX_NODES = 1024                  # fused gather only when the node table is small
_FUSED_X_VMEM_BUDGET = 2 * 1024 * 1024   # raw bytes of the resident (D, Npad) node table
_FUSED_ONEHOT_BUDGET = 2 * 1024 * 1024   # per-tile (Npad, TE) one-hot transient


def _round_up(v, m):
    return ((v + m - 1) // m) * m


def _cdiv(a, b):
    return -(-a // b)


def _tpu_info():
    try:
        return pltpu.get_tpu_info()
    except Exception:
        return None


def _detect_num_tensorcores():
    info = _tpu_info()
    if info is not None:
        for name in ("num_cores", "core_count", "num_tensorcores", "cores_per_chip"):
            v = getattr(info, name, None)
            if isinstance(v, int) and 0 < v <= 8:
                return v
    # Unknown -> assume 2 (v7x); an unused halves axis on 1-TC chips is ~free.
    return 2


def _detect_vmem_capacity():
    info = _tpu_info()
    if info is not None:
        v = getattr(info, "vmem_capacity_bytes", None)
        if isinstance(v, int) and v > 0:
            return v
    return 64 << 20   # conservative (v7x per-TC VMEM)


# ---------------------------------------------------------------------------
# Kernel bodies.  Layout convention: features along sublanes, edges along lanes,
# so all per-edge quantities are (1, TE) lane-dense.
# ---------------------------------------------------------------------------
def _accumulate_hinge(tile_edges, xs, xd, thrd_ref, n_ref, acc_ref):
    """xs/xd: (D, TE) f32 tiles.  Adds this tile's masked hinge sum into acc_ref."""
    dot = jnp.sum(xs * xd, axis=0, keepdims=True)        # (1, TE)
    ns2 = jnp.sum(xs * xs, axis=0, keepdims=True)
    nd2 = jnp.sum(xd * xd, axis=0, keepdims=True)
    # torch F.cosine_similarity: w12 / sqrt(clamp(w1*w2, eps^2)); rsqrt -> EUP slot.
    eps2 = jnp.float32(1e-8) * jnp.float32(1e-8)
    sims = dot * lax.rsqrt(jnp.maximum(ns2 * nd2, eps2))
    hinge = jnp.maximum(thrd_ref[0] - sims, 0.0)          # (1, TE) lane-dense

    tile_start = (pl.program_id(0) * pl.num_programs(1) + pl.program_id(1)) * tile_edges
    n_edges = n_ref[0]

    @pl.when(tile_start + tile_edges <= n_edges)          # interior tile: no mask work
    def _interior():
        acc_ref[...] += jnp.sum(hinge)

    @pl.when(tile_start + tile_edges > n_edges)           # boundary / fully-padded tile
    def _boundary():
        cols = lax.broadcasted_iota(jnp.int32, (1, tile_edges), 1) + tile_start
        acc_ref[...] += jnp.sum(jnp.where(cols < n_edges, hinge, 0.0))


def _homo_loss_stream_kernel(tile_edges, thrd_ref, n_ref, xs_ref, xd_ref,
                             out_ref, acc_ref):
    # thrd_ref : (1,)      f32 SMEM  hinge threshold
    # n_ref    : (1,)      i32 SMEM  number of real edges
    # xs_ref   : (D, TE)   VMEM      x[src] tile (native dtype, edges along lanes)
    # xd_ref   : (D, TE)   VMEM      x[dst] tile
    # out_ref  : (8, 128)  f32 VMEM  per-half partial sum
    # acc_ref  : (8, 128)  f32 VMEM  running partial sum for this half
    t = pl.program_id(1)

    @pl.when(t == 0)
    def _init():
        acc_ref[...] = jnp.zeros_like(acc_ref)

    xs = xs_ref[...].astype(jnp.float32)   # upcast in-kernel (stream native dtype)
    xd = xd_ref[...].astype(jnp.float32)
    _accumulate_hinge(tile_edges, xs, xd, thrd_ref, n_ref, acc_ref)

    @pl.when(t == pl.num_programs(1) - 1)
    def _finalize():
        out_ref[...] = acc_ref[...]


def _homo_loss_fused_kernel(tile_edges, n_nodes_pad, thrd_ref, n_ref, idx_ref, x_ref,
                            out_ref, acc_ref):
    # idx_ref : (2, TE)     i32 VMEM  [src; dst] indices for this tile
    # x_ref   : (D, Npad)   VMEM      full transposed node table (resident; constant block)
    t = pl.program_id(1)

    @pl.when(t == 0)
    def _init():
        acc_ref[...] = jnp.zeros_like(acc_ref)

    x_t = x_ref[...].astype(jnp.float32)                      # (D, Npad)
    src = idx_ref[0:1, :]                                     # (1, TE)
    dst = idx_ref[1:2, :]
    node_iota = lax.broadcasted_iota(jnp.int32, (n_nodes_pad, tile_edges), 0)
    onehot_src = (node_iota == src).astype(jnp.float32)       # (Npad, TE)
    onehot_dst = (node_iota == dst).astype(jnp.float32)
    # Row gather as a one-hot matmul on the MXU; no per-edge HBM traffic at all.
    xs = jnp.dot(x_t, onehot_src, preferred_element_type=jnp.float32,
                 precision=lax.Precision.HIGHEST)             # (D, TE)
    xd = jnp.dot(x_t, onehot_dst, preferred_element_type=jnp.float32,
                 precision=lax.Precision.HIGHEST)
    _accumulate_hinge(tile_edges, xs, xd, thrd_ref, n_ref, acc_ref)

    @pl.when(t == pl.num_programs(1) - 1)
    def _finalize():
        out_ref[...] = acc_ref[...]


# ---------------------------------------------------------------------------
# Wrapper.
# ---------------------------------------------------------------------------
def homo_loss(trigger_edge_index, x, thrd, num_edges=None, gather_in_kernel=None):
    """trigger_edge_index: (2, E) int; x: (N, D) float; thrd: scalar.

    `num_edges` (may be traced) lets one compiled kernel serve a bucketed/padded
    edge buffer: only the first `num_edges` columns contribute (clamped to E).
    NOTE: num_edges == 0 yields NaN, matching torch's mean over an empty tensor.
    `gather_in_kernel`: None = auto (fused when the node table fits VMEM),
    True/False forces the fused / streaming path.
    """
    if not jnp.issubdtype(x.dtype, jnp.floating):
        x = x.astype(jnp.float32)
    N, D = x.shape
    E = int(trigger_edge_index.shape[1])
    itemsize = jnp.dtype(x.dtype).itemsize

    if num_edges is None:
        num_edges = E
    n_val = jnp.minimum(jnp.asarray(num_edges, jnp.int32), jnp.int32(E)).reshape((1,))
    thrd_arr = jnp.asarray(thrd, jnp.float32).reshape((1,))

    n_pad = _round_up(max(N, 1), _LANE)
    if gather_in_kernel is None:
        gather_in_kernel = (n_pad <= _FUSED_MAX_NODES and
                            D * n_pad * itemsize <= _FUSED_X_VMEM_BUDGET)

    # --- halves split (only useful with >=2 TensorCores and enough edges).
    num_halves = 1
    if E >= 4 * _MIN_TILE_EDGES and _detect_num_tensorcores() >= 2:
        num_halves = 2

    # --- tile sizing: TE is a multiple of 128 (edges live on the lane axis).
    if gather_in_kernel:
        te_cap = max(_MIN_TILE_EDGES,
                     (_FUSED_ONEHOT_BUDGET // (n_pad * 4))
                     // _MIN_TILE_EDGES * _MIN_TILE_EDGES)
    else:
        te_cap = max(_MIN_TILE_EDGES,
                     (_TILE_VMEM_BUDGET // (4 * D * itemsize))
                     // _MIN_TILE_EDGES * _MIN_TILE_EDGES)
    TE = int(min(te_cap, _MAX_TILE_EDGES,
                 max(_MIN_TILE_EDGES,
                     _round_up(_cdiv(max(E, 1), num_halves), _MIN_TILE_EDGES))))
    T = int(max(1, _cdiv(max(E, 1), num_halves * TE)))
    Ep = num_halves * T * TE

    # Padded edge indices (pad columns point at node 0 and are masked in-kernel).
    idx_pad = jnp.zeros((2, Ep), jnp.int32).at[:, :E].set(
        trigger_edge_index.astype(jnp.int32))

    x_t = jnp.swapaxes(x, 0, 1)   # (D, N), native dtype

    if gather_in_kernel:
        x_in = x_t if N == n_pad else jnp.pad(x_t, ((0, 0), (0, n_pad - N)))
        kernel = functools.partial(_homo_loss_fused_kernel, TE, n_pad)
        in_specs = [
            pl.BlockSpec(memory_space=pltpu.SMEM),                       # thrd
            pl.BlockSpec(memory_space=pltpu.SMEM),                       # n_edges
            pl.BlockSpec((2, TE), lambda h, t: (0, h * T + t)),          # index tile
            pl.BlockSpec((D, n_pad), lambda h, t: (0, 0)),               # resident x.T
        ]
        operands = (thrd_arr, n_val, idx_pad, x_in)
        flops = 4 * Ep * n_pad * D + 8 * Ep * D
        bytes_accessed = D * n_pad * itemsize + 2 * Ep * 4
        footprint = (2 * D * n_pad * itemsize + 4 * 2 * TE * 4 +
                     2 * n_pad * TE * 4 + 2 * D * TE * 4)
    else:
        # XLA fused gather fallback (large node tables), in the native dtype and
        # already in the (D, Ep) edges-on-lanes layout; no feature padding in HBM.
        xs_t = jnp.take(x_t, idx_pad[0], axis=1)   # (D, Ep)
        xd_t = jnp.take(x_t, idx_pad[1], axis=1)   # (D, Ep)
        kernel = functools.partial(_homo_loss_stream_kernel, TE)
        in_specs = [
            pl.BlockSpec(memory_space=pltpu.SMEM),                       # thrd
            pl.BlockSpec(memory_space=pltpu.SMEM),                       # n_edges
            pl.BlockSpec((D, TE), lambda h, t: (0, h * T + t)),          # x[src] tiles
            pl.BlockSpec((D, TE), lambda h, t: (0, h * T + t)),          # x[dst] tiles
        ]
        operands = (thrd_arr, n_val, xs_t, xd_t)
        flops = 8 * Ep * D
        bytes_accessed = 2 * Ep * D * itemsize
        footprint = 4 * TE * D * itemsize

    # Generation-aware VMEM limit (<=32 MiB; always covers our footprint).
    cap = _detect_vmem_capacity()
    vmem_limit = max(16 << 20, min(32 << 20, cap // 4), 2 * footprint)
    vmem_limit = int(min(vmem_limit, max(cap - (8 << 20), 16 << 20)))

    cost = pl.CostEstimate(
        flops=int(flops),
        transcendentals=int(Ep),
        bytes_accessed=int(bytes_accessed + num_halves * _SUBLANE * _LANE * 4),
    )

    partials = pl.pallas_call(
        kernel,
        out_shape=jax.ShapeDtypeStruct((num_halves * _SUBLANE, _LANE), jnp.float32),
        grid=(num_halves, T),
        in_specs=in_specs,
        out_specs=pl.BlockSpec((_SUBLANE, _LANE), lambda h, t: (h, 0)),
        scratch_shapes=[pltpu.VMEM((_SUBLANE, _LANE), jnp.float32)],
        compiler_params=pltpu.CompilerParams(
            dimension_semantics=("parallel", "arbitrary"),
            vmem_limit_bytes=vmem_limit,
        ),
        cost_estimate=cost,
    )(*operands)

    total = jnp.sum(partials[::_SUBLANE, 0])
    return total / n_val[0].astype(jnp.float32)


def homo_loss_ref(trigger_edge_index, x, thrd):
    """Pure-JAX reference matching torch F.cosine_similarity semantics."""
    a = x[trigger_edge_index[0]].astype(jnp.float32)
    b = x[trigger_edge_index[1]].astype(jnp.float32)
    eps = 1e-8
    w12 = jnp.sum(a * b, axis=-1)
    w1 = jnp.sum(a * a, axis=-1)
    w2 = jnp.sum(b * b, axis=-1)
    sims = w12 / jnp.sqrt(jnp.maximum(w1 * w2, eps * eps))
    return jnp.mean(jnp.maximum(thrd - sims, 0.0))


if __name__ == "__main__":
    key = jax.random.PRNGKey(0)
    k_x, k_src, k_dst = jax.random.split(key, 3)

    N, D, E = 12, 32, 8
    x = jax.random.normal(k_x, (N, D), dtype=jnp.float32)
    src = jax.random.randint(k_src, (E,), 0, N, dtype=jnp.int32)
    dst = jax.random.randint(k_dst, (E,), 0, N, dtype=jnp.int32)
    trigger_edge_index = jnp.stack([src, dst], axis=0)  # (2, E)
    thrd = 0.5

    ref = homo_loss_ref(trigger_edge_index, x, thrd)

    # 1) default: fused in-kernel (one-hot MXU) gather, node table resident in VMEM.
    loss_fused = jax.block_until_ready(homo_loss(trigger_edge_index, x, thrd))
    assert jnp.allclose(loss_fused, ref, atol=2e-5, rtol=1e-4), (loss_fused, ref)

    # 2) streaming fallback: XLA gather of native-dtype rows, kernel upcasts.
    loss_stream = jax.block_until_ready(
        homo_loss(trigger_edge_index, x, thrd, gather_in_kernel=False))
    assert jnp.allclose(loss_stream, ref, atol=1e-5, rtol=1e-4), (loss_stream, ref)

    # 3) bucketed call: only the first 5 edges of the padded buffer are real.
    n_real = 5
    ref_b = homo_loss_ref(trigger_edge_index[:, :n_real], x, thrd)
    loss_b = jax.block_until_ready(
        homo_loss(trigger_edge_index, x, thrd, num_edges=n_real))
    assert jnp.allclose(loss_b, ref_b, atol=2e-5, rtol=1e-4), (loss_b, ref_b)

    # 4) bf16 features: streamed in the native dtype and upcast inside the kernel.
    x_bf16 = x.astype(jnp.bfloat16)
    ref_bf = homo_loss_ref(trigger_edge_index, x_bf16, thrd)
    loss_bf = jax.block_until_ready(
        homo_loss(trigger_edge_index, x_bf16, thrd, gather_in_kernel=False))
    assert jnp.allclose(loss_bf, ref_bf, atol=2e-5, rtol=1e-4), (loss_bf, ref_bf)

    print("KERNEL_OK")
</pallas_src>

<mosaic_0001>
module attributes {stable_mosaic.version = 11 : i64} {
  func.func @_homo_loss_fused_kernel(%arg0: i32, %arg1: i32, %arg2: memref<1xf32, #tpu.memory_space<smem>>, %arg3: memref<1xi32, #tpu.memory_space<smem>>, %arg4: memref<2x128xi32, #tpu.memory_space<vmem>>, %arg5: memref<32x128xf32, #tpu.memory_space<vmem>>, %arg6: memref<8x128xf32, #tpu.memory_space<vmem>>, %arg7: memref<8x128xf32, #tpu.memory_space<vmem>>) attributes {dimension_semantics = [#tpu.dimension_semantics<parallel>, #tpu.dimension_semantics<arbitrary>], iteration_bounds = array<i64: 1, 1>, scalar_prefetch = 0 : i64, scratch_operands = 1 : i64, tpu.core_type = #tpu.core_type<tc>, window_params = [{transform_indices = @transform_0, window_bounds = array<i64: 1>}, {transform_indices = @transform_1, window_bounds = array<i64: 1>}, {transform_indices = @transform_2, window_bounds = array<i64: 2, 128>}, {pipeline_mode = #tpu.pipeline_mode<synchronous>, transform_indices = @transform_3, window_bounds = array<i64: 32, 128>}, {transform_indices = @transform_4, window_bounds = array<i64: 8, 128>}]} {
    %c0_i32 = arith.constant 0 : i32
    %0 = arith.cmpi eq, %arg1, %c0_i32 : i32
    %1 = arith.extui %0 : i1 to i32
    %c0_i32_0 = arith.constant 0 : i32
    %2 = arith.cmpi ne, %1, %c0_i32_0 : i32
    scf.if %2 {
      %cst_20 = arith.constant 0.000000e+00 : f32
      %52 = vector.broadcast %cst_20 : f32 to vector<8x128xf32>
      %c0_21 = arith.constant 0 : index
      %c0_22 = arith.constant 0 : index
      %53 = vector.load %arg7[%c0_21, %c0_22] : memref<8x128xf32, #tpu.memory_space<vmem>>, vector<8x128xf32>
      tpu.vector_store %arg7[%c0_21, %c0_22], %52 {strides = array<i32>} : memref<8x128xf32, #tpu.memory_space<vmem>>, vector<8x128xf32>,
    } else {
    }
    %c0 = arith.constant 0 : index
    %c0_1 = arith.constant 0 : index
    %3 = vector.load %arg5[%c0, %c0_1] : memref<32x128xf32, #tpu.memory_space<vmem>>, vector<32x128xf32>
    %c0_2 = arith.constant 0 : index
    %c0_3 = arith.constant 0 : index
    %4 = vector.load %arg4[%c0_2, %c0_3] : memref<2x128xi32, #tpu.memory_space<vmem>>, vector<1x128xi32>
    %c1 = arith.constant 1 : index
    %c0_4 = arith.constant 0 : index
    %5 = vector.load %arg4[%c1, %c0_4] : memref<2x128xi32, #tpu.memory_space<vmem>>, vector<1x128xi32>
    %6 = tpu.iota {dimensions = array<i32: 0>} : vector<128x128xi32>
    %7 = vector.broadcast %4 : vector<1x128xi32> to vector<128x128xi32>
    %8 = arith.cmpi eq, %6, %7 : vector<128x128xi32>
    %9 = arith.extui %8 : vector<128x128xi1> to vector<128x128xi32>
    %10 = arith.sitofp %9 : vector<128x128xi32> to vector<128x128xf32>
    %11 = vector.broadcast %5 : vector<1x128xi32> to vector<128x128xi32>
    %12 = arith.cmpi eq, %6, %11 : vector<128x128xi32>
    %13 = arith.extui %12 : vector<128x128xi1> to vector<128x128xi32>
    %14 = arith.sitofp %13 : vector<128x128xi32> to vector<128x128xf32>
    %cst = arith.constant dense<0.000000e+00> : vector<32x128xf32>
    %15 = tpu.matmul %3, %10, %cst {dimension_numbers = #tpu.dot_dimension_numbers<[1], [0], [0], [1], [0, 0, 1, 1], [], []>, precision = #tpu.contract_precision<fp32>} : vector<32x128xf32>, vector<128x128xf32>, vector<32x128xf32> -> vector<32x128xf32>
    %cst_5 = arith.constant dense<0.000000e+00> : vector<32x128xf32>
    %16 = tpu.matmul %3, %14, %cst_5 {dimension_numbers = #tpu.dot_dimension_numbers<[1], [0], [0], [1], [0, 0, 1, 1], [], []>, precision = #tpu.contract_precision<fp32>} : vector<32x128xf32>, vector<128x128xf32>, vector<32x128xf32> -> vector<32x128xf32>
    %17 = arith.mulf %15, %16 : vector<32x128xf32>
    %cst_6 = arith.constant dense<0.000000e+00> : vector<128xf32>
    %18 = vector.multi_reduction <add>, %17, %cst_6 [0] : vector<32x128xf32> to vector<128xf32>
    %19 = vector.shape_cast %18 : vector<128xf32> to vector<1x128xf32>
    %20 = arith.mulf %15, %15 : vector<32x128xf32>
    %cst_7 = arith.constant dense<0.000000e+00> : vector<128xf32>
    %21 = vector.multi_reduction <add>, %20, %cst_7 [0] : vector<32x128xf32> to vector<128xf32>
    %22 = vector.shape_cast %21 : vector<128xf32> to vector<1x128xf32>
    %23 = arith.mulf %16, %16 : vector<32x128xf32>
    %cst_8 = arith.constant dense<0.000000e+00> : vector<128xf32>
    %24 = vector.multi_reduction <add>, %23, %cst_8 [0] : vector<32x128xf32> to vector<128xf32>
    %25 = vector.shape_cast %24 : vector<128xf32> to vector<1x128xf32>
    %cst_9 = arith.constant 9.99999993E-9 : f32
    %cst_10 = arith.constant 9.99999993E-9 : f32
    %26 = arith.mulf %cst_9, %cst_10 : f32
    %27 = arith.mulf %22, %25 : vector<1x128xf32>
    %28 = vector.broadcast %26 : f32 to vector<1x128xf32>
    %29 = arith.maximumf %27, %28 : vector<1x128xf32>
    %30 = math.rsqrt %29 : vector<1x128xf32>
    %31 = arith.mulf %19, %30 : vector<1x128xf32>
    %c0_11 = arith.constant 0 : index
    %32 = memref.load %arg2[%c0_11] : memref<1xf32, #tpu.memory_space<smem>>
    %33 = vector.broadcast %32 : f32 to vector<1x128xf32>
    %34 = arith.subf %33, %31 : vector<1x128xf32>
    %cst_12 = arith.constant 0.000000e+00 : f32
    %35 = vector.broadcast %cst_12 : f32 to vector<1x128xf32>
    %36 = arith.maximumf %34, %35 : vector<1x128xf32>
    %c1_i32 = arith.constant 1 : i32
    %37 = arith.muli %arg0, %c1_i32 : i32
    %38 = arith.addi %37, %arg1 : i32
    %c128_i32 = arith.constant 128 : i32
    %39 = arith.muli %38, %c128_i32 : i32
    %c0_13 = arith.constant 0 : index
    %40 = memref.load %arg3[%c0_13] : memref<1xi32, #tpu.memory_space<smem>>
    %c128_i32_14 = arith.constant 128 : i32
    %41 = arith.addi %39, %c128_i32_14 : i32
    %42 = arith.cmpi sle, %41, %40 : i32
    %43 = arith.extui %42 : i1 to i32
    %c0_i32_15 = arith.constant 0 : i32
    %44 = arith.cmpi ne, %43, %c0_i32_15 : i32
    scf.if %44 {
      %c0_20 = arith.constant 0 : index
      %c0_21 = arith.constant 0 : index
      %52 = vector.load %arg7[%c0_20, %c0_21] : memref<8x128xf32, #tpu.memory_space<vmem>>, vector<8x128xf32>
      %53 = vector.shape_cast %36 : vector<1x128xf32> to vector<1x1x128xf32>
      %cst_22 = arith.constant dense<0.000000e+00> : vector<1xf32>
      %54 = vector.multi_reduction <add>, %53, %cst_22 [1, 2] : vector<1x1x128xf32> to vector<1xf32>
      %55 = vector.shape_cast %54 : vector<1xf32> to vector<1x1x1xf32>
      %56 = vector.extract %55[0, 0, 0] : f32 from vector<1x1x1xf32>
      %57 = vector.broadcast %56 : f32 to vector<8x128xf32>
      %58 = arith.addf %52, %57 : vector<8x128xf32>
      %c0_23 = arith.constant 0 : index
      %c0_24 = arith.constant 0 : index
      %59 = vector.load %arg7[%c0_23, %c0_24] : memref<8x128xf32, #tpu.memory_space<vmem>>, vector<8x128xf32>
      tpu.vector_store %arg7[%c0_23, %c0_24], %58 {strides = array<i32>} : memref<8x128xf32, #tpu.memory_space<vmem>>, vector<8x128xf32>,
    } else {
    }
    %c128_i32_16 = arith.constant 128 : i32
    %45 = arith.addi %39, %c128_i32_16 : i32
    %46 = arith.cmpi sgt, %45, %40 : i32
    %47 = arith.extui %46 : i1 to i32
    %c0_i32_17 = arith.constant 0 : i32
    %48 = arith.cmpi ne, %47, %c0_i32_17 : i32
    scf.if %48 {
      %52 = tpu.iota {dimensions = array<i32: 1>} : vector<1x128xi32>
      %53 = vector.broadcast %39 : i32 to vector<1x128xi32>
      %54 = arith.addi %52, %53 : vector<1x128xi32>
      %c0_20 = arith.constant 0 : index
      %c0_21 = arith.constant 0 : index
      %55 = vector.load %arg7[%c0_20, %c0_21] : memref<8x128xf32, #tpu.memory_space<vmem>>, vector<8x128xf32>
      %56 = vector.broadcast %40 : i32 to vector<1x128xi32>
      %57 = arith.cmpi slt, %54, %56 : vector<1x128xi32>
      %cst_22 = arith.constant 0.000000e+00 : f32
      %58 = vector.broadcast %cst_22 : f32 to vector<1x128xf32>
      %59 = arith.select %57, %36, %58 : vector<1x128xi1>, vector<1x128xf32>
      %60 = vector.shape_cast %59 : vector<1x128xf32> to vector<1x1x128xf32>
      %cst_23 = arith.constant dense<0.000000e+00> : vector<1xf32>
      %61 = vector.multi_reduction <add>, %60, %cst_23 [1, 2] : vector<1x1x128xf32> to vector<1xf32>
      %62 = vector.shape_cast %61 : vector<1xf32> to vector<1x1x1xf32>
      %63 = vector.extract %62[0, 0, 0] : f32 from vector<1x1x1xf32>
      %64 = vector.broadcast %63 : f32 to vector<8x128xf32>
      %65 = arith.addf %55, %64 : vector<8x128xf32>
      %c0_24 = arith.constant 0 : index
      %c0_25 = arith.constant 0 : index
      %66 = vector.load %arg7[%c0_24, %c0_25] : memref<8x128xf32, #tpu.memory_space<vmem>>, vector<8x128xf32>
      tpu.vector_store %arg7[%c0_24, %c0_25], %65 {strides = array<i32>} : memref<8x128xf32, #tpu.memory_space<vmem>>, vector<8x128xf32>,
    } else {
    }
    %c0_i32_18 = arith.constant 0 : i32
    %49 = arith.cmpi eq, %arg1, %c0_i32_18 : i32
    %50 = arith.extui %49 : i1 to i32
    %c0_i32_19 = arith.constant 0 : i32
    %51 = arith.cmpi ne, %50, %c0_i32_19 : i32
    scf.if %51 {
      %c0_20 = arith.constant 0 : index
      %c0_21 = arith.constant 0 : index
      %52 = vector.load %arg7[%c0_20, %c0_21] : memref<8x128xf32, #tpu.memory_space<vmem>>, vector<8x128xf32>
      %c0_22 = arith.constant 0 : index
      %c0_23 = arith.constant 0 : index
      %53 = vector.load %arg6[%c0_22, %c0_23] : memref<8x128xf32, #tpu.memory_space<vmem>>, vector<8x128xf32>
      tpu.vector_store %arg6[%c0_22, %c0_23], %52 {strides = array<i32>} : memref<8x128xf32, #tpu.memory_space<vmem>>, vector<8x128xf32>,
    } else {
    }
    return
  }
  func.func @transform_0(%arg0: i32, %arg1: i32) -> i32 {
    %c0_i32 = arith.constant 0 : i32
    %c0_i32_0 = arith.constant 0 : i32
    return %c0_i32 : i32
  }
  func.func @transform_1(%arg0: i32, %arg1: i32) -> i32 {
    %c0_i32 = arith.constant 0 : i32
    %c0_i32_0 = arith.constant 0 : i32
    return %c0_i32 : i32
  }
  func.func @transform_2(%arg0: i32, %arg1: i32) -> (i32, i32) {
    %c1_i32 = arith.constant 1 : i32
    %0 = arith.muli %arg0, %c1_i32 : i32
    %1 = arith.addi %0, %arg1 : i32
    %c0_i32 = arith.constant 0 : i32
    %c0_i32_0 = arith.constant 0 : i32
    return %c0_i32, %1 : i32, i32
  }
  func.func @transform_3(%arg0: i32, %arg1: i32) -> (i32, i32) {
    %c0_i32 = arith.constant 0 : i32
    %c0_i32_0 = arith.constant 0 : i32
    %c0_i32_1 = arith.constant 0 : i32
    return %c0_i32, %c0_i32_0 : i32, i32
  }
  func.func @transform_4(%arg0: i32, %arg1: i32) -> (i32, i32) {
    %c0_i32 = arith.constant 0 : i32
    %c0_i32_0 = arith.constant 0 : i32
    return %arg0, %c0_i32 : i32, i32
  }
}

</mosaic_0001>

<bundles_post_ra>
// kernel: tpu_custom_call.1
= control target key start
LH: loop header
LB: loop body
LE: loop exit
PB: predicated region body
PF: predicated region fallthrough
CT: control target
= control target key end

     0   :  { %11 = vsyncpa [#allocation6], 0  ;;  %s4151_s0 = inlined_call_operand.<no memory space> [shape: f32[1], index: 0, kind: input, shape index: {}]   ;;  %s4152_s1 = inlined_call_operand.<no memory space> [shape: s32[1], index: 1, kind: input, shape index: {}]   ;;  %s4153_s2 = inlined_call_operand.vmem [shape: s32[2,128], index: 2, kind: input, shape index: {}]   ;;  %s4154_s3 = inlined_call_operand.hbm [shape: f32[32,128], index: 3, kind: input, shape index: {}]   ;;  %s4155_s4 = inlined_call_operand.hbm [shape: f32[8,128], index: 4, kind: output, shape index: {}]  }
   0x1   :  { %12 = vsyncpa [#allocation7], 0  ;;  %s3159_s15 = smov [#allocation5]   ;;  %s3111_s19 = scalar_lea.hbm %s4154_s3, 512 }
   0x2   :  { %s30_s16 = sshll.u32 %s3159_s15, 4  ;;  %p3112_p0 = scmp.ne.s32.totalorder %s4154_s3, %s3111_s19  ;;  %s31_s16 = int_to_ptr.vmem [resolvable:$true] %s30_s16 }
   0x3   :  { %p3115_p1 = scmp.lt.u32.totalorder %s3111_s19, %s4154_s3 }
   0x5   :  { %p3117_p2 = pnand %p3115_p1, %p3112_p0 }
   0x7   :  { %3120 = shalt.err (!%p3117_p2)
}
   0x8   :  { %s3121_s24 = scalar_lea.vmem %s31_s16, 512  ;;  %p3126_p4 = scmp.lt.s32.totalorder %s31_s16, %s31_s16 }
   0x9   :  { %p3122_p3 = scmp.ne.s32.totalorder %s31_s16, %s3121_s24  ;;  %p3127_p5 = scmp.lt.s32.totalorder %s3121_s24, %s3121_s24 }
   0xb   :  { %p3128_p6 = por %p3127_p5, %p3126_p4 }
   0xd   :  { %p3129_p7 = pnand %p3128_p6, %p3122_p3 }
   0xf   :  { %3132 = shalt.err (!%p3129_p7)
}
  0x10   :  { %s3160_s25 = smov 128   ;;  %s3161_s26 = smov 8  }
  0x11   :  { %36 = dma.hbm_to_vmem [thread:$0]  %s4154_s3, 512, %s31_s16, [#allocation6], %s3160_s25, %s3160_s25, %s3161_s26  }
  0x12   :  { %3155 = dma.done.wait [#allocation6], 512  }
  0x13   :  { %3156 = vsyncadd [#allocation6], 4294966784  ;;  %v4164_v0 = vlaneseq  ;;  %v3162_v1 = vmov 0.0   ;;  %v3223_v15 = vld [vmem:[%s4153_s2] ss:$0 sm:$0xff]  ;;  %v4236_v43 = vmov 0 }
  0x14   :  { %55 = vst [vmem:[#allocation2] sm:$0xff] %v3162_v1  ;;  %v3228_v16 = vld [vmem:[%s4153_s2 + $0x1] ss:$0 sm:$0xff]  ;;  %v4186_v24 = vmov 1.0|1.0   ;;  %v4239_v48 = vmov 0 }
  0x15   :  { %v63_v2 = vshrl.u32 %v4164_v0, 7  ;;  %v3346_v51 = vld [vmem:[#allocation5] sm:$0xff]  ;;  %v4242_v54 = vmov 0  ;;  %v4245_v59 = vmov 0  ;;  %p1976_p8 = scmp.lt.s32.totalorder %s4152_s1, 128 }
  0x16   :  { %v3384_v62 = vand.u32 4294901760, %v3346_v51 }
  0x17   :  { %v64_v3 = vadd.s32 8, %v63_v2  ;;  %v65_v4 = vadd.s32 16, %v63_v2  ;;  %v66_v5 = vadd.s32 24, %v63_v2  ;;  %v3204_v6 = vadd.s32 32, %v63_v2 }
  0x18   :  { %v68_v7 = vadd.s32 40, %v63_v2  ;;  %v3206_v8 = vadd.s32 48, %v63_v2  ;;  %v3208_v9 = vadd.s32 56, %v63_v2  ;;  %v3210_v10 = vadd.s32 64, %v63_v2 }
  0x19   :  { %v3212_v11 = vadd.s32 72, %v63_v2  ;;  %v3214_v12 = vadd.s32 80, %v63_v2  ;;  %v3216_v13 = vadd.s32 88, %v63_v2  ;;  %v3218_v14 = vadd.s32 96, %v63_v2 }
  0x1a   :  { %v3230_v17 = vadd.s32 104, %v63_v2  ;;  %v3232_v18 = vadd.s32 112, %v63_v2  ;;  %vm83_vm0 = vcmp.eq.s32.totalorder %v63_v2, %v3223_v15  ;;  %vm84_vm1 = vcmp.eq.s32.totalorder %v64_v3, %v3223_v15 }
  0x1b   :  { %vm135_vm2 = vcmp.eq.s32.totalorder %v63_v2, %v3228_v16  ;;  %vm136_vm3 = vcmp.eq.s32.totalorder %v64_v3, %v3228_v16  ;;  %v1846_v19 = vsel %vm83_vm0, 1.0, %v3162_v1  ;;  %v1847_v20 = vsel %vm84_vm1, 1.0, %v3162_v1  ;;  %vm3240_vm4 = vmpackc.low %vm84_vm1, %vm83_vm0 }
  0x1c   :  { %v1863_v22 = vsel %vm135_vm2, 1.0, %v3162_v1  ;;  %v1864_v23 = vsel %vm136_vm3, 1.0, %v3162_v1  ;;  %2676 = vmatprep.subr.msk.bf16.mxu0 %vm3240_vm4, %v4186_v24  ;;  %v3249_v25 = vsub.f32 %v1846_v19, %v1846_v19  ;;  %v3251_v26 = vsub.f32 %v1847_v20, %v1847_v20  ;;  %vm3253_vm5 = vmpackc.low %vm136_vm3, %vm135_vm2 }
  0x1d   :  { %v3257_v28 = vsub.f32 %v1863_v22, %v1863_v22  ;;  %v3259_v29 = vsub.f32 %v1864_v23, %v1864_v23  ;;  %2868 = vmatprep.subr.msk.bf16.mxu1 %vm3253_vm5, %v4186_v24  ;;  %2678 = vmatpush3.bf16.msk.msra.mxu0 %vm3240_vm4, %v4186_v24  ;;  %vm85_vm6 = vcmp.eq.s32.totalorder %v65_v4, %v3223_v15  ;;  %v3270_v30 = vadd.s32 120, %v63_v2 }
  0x1e   :  { %vm86_vm7 = vcmp.eq.s32.totalorder %v66_v5, %v3223_v15  ;;  %vm137_vm8 = vcmp.eq.s32.totalorder %v65_v4, %v3228_v16  ;;  %2870 = vmatpush3.bf16.msk.msra.mxu1 %vm3253_vm5, %v4186_v24  ;;  %v1848_v31 = vsel %vm85_vm6, 1.0, %v3162_v1  ;;  %vm138_vm10 = vcmp.eq.s32.totalorder %v66_v5, %v3228_v16 }
  0x1f   :  { %v1849_v32 = vsel %vm86_vm7, 1.0, %v3162_v1  ;;  %vm3277_vm9 = vmpackc.low %vm86_vm7, %vm85_vm6  ;;  %v1865_v34 = vsel %vm137_vm8, 1.0, %v3162_v1  ;;  %v3286_v35 = vsub.f32 %v1848_v31, %v1848_v31  ;;  %v1866_v37 = vsel %vm138_vm10, 1.0, %v3162_v1 }
  0x20   :  { %2680 = vmatprep.subr.msk.bf16.mxu0 %vm3277_vm9, %v4186_v24  ;;  %v3288_v36 = vsub.f32 %v1849_v32, %v1849_v32  ;;  %vm3291_vm11 = vmpackc.low %vm138_vm10, %vm137_vm8  ;;  %v3295_v39 = vsub.f32 %v1865_v34, %v1865_v34  ;;  %v3300_v40 = vsub.f32 %v1866_v37, %v1866_v37  ;;  %vm87_vm12 = vcmp.eq.s32.totalorder %v3204_v6, %v3223_v15 }
  0x21   :  { %2872 = vmatprep.subr.msk.bf16.mxu1 %vm3291_vm11, %v4186_v24  ;;  %vm88_vm13 = vcmp.eq.s32.totalorder %v68_v7, %v3223_v15  ;;  %vm139_vm14 = vcmp.eq.s32.totalorder %v3204_v6, %v3228_v16  ;;  %2682 = vmatpush3.bf16.msk.msra.mxu0 %vm3277_vm9, %v4186_v24  ;;  %v1850_v41 = vsel %vm87_vm12, 1.0, %v3162_v1  ;;  %vm140_vm0 = vcmp.eq.s32.totalorder %v68_v7, %v3228_v16 }
  0x22   :  { %v1851_v42 = vsel %vm88_vm13, 1.0, %v3162_v1  ;;  %vm3312_vm15 = vmpackc.low %vm88_vm13, %vm87_vm12  ;;  %v1867_v44 = vsel %vm139_vm14, 1.0, %v3162_v1  ;;  %2874 = vmatpush3.bf16.msk.msra.mxu1 %vm3291_vm11, %v4186_v24  ;;  %v3324_v45 = vsub.f32 %v1850_v41, %v1850_v41  ;;  %v1868_v47 = vsel %vm140_vm0, 1.0, %v3162_v1 }
  0x23   :  { %v4237_v43 = vsel %vm3312_vm15, 4294967295, %v4236_v43  ;;  %2684 = vmatprep.subr.msk.bf16.mxu0 %vm3312_vm15, %v4186_v24  ;;  %v3326_v46 = vsub.f32 %v1851_v42, %v1851_v42  ;;  %vm3329_vm1 = vmpackc.low %vm140_vm0, %vm139_vm14  ;;  %v3333_v49 = vsub.f32 %v1867_v44, %v1867_v44  ;;  %v3338_v50 = vsub.f32 %v1868_v47, %v1868_v47 }
  0x24   :  { %4238 = vst [vmem:[#allocation11_spill] sm:$0xff] %v4237_v43  ;;  %v4240_v48 = vsel %vm3329_vm1, 4294967295, %v4239_v48  ;;  %2876 = vmatprep.subr.msk.bf16.mxu1 %vm3329_vm1, %v4186_v24  ;;  %vm89_vm2 = vcmp.eq.s32.totalorder %v3206_v8, %v3223_v15  ;;  %vm90_vm3 = vcmp.eq.s32.totalorder %v3208_v9, %v3223_v15  ;;  %vm141_vm6 = vcmp.eq.s32.totalorder %v3206_v8, %v3228_v16 }
  0x25   :  { %4241 = vst [vmem:[#allocation12_spill] sm:$0xff] %v4240_v48  ;;  %v1852_v52 = vsel %vm89_vm2, 1.0, %v3162_v1  ;;  %v1853_v53 = vsel %vm90_vm3, 1.0, %v3162_v1  ;;  %vm3350_vm7 = vmpackc.low %vm90_vm3, %vm89_vm2  ;;  %vm142_vm8 = vcmp.eq.s32.totalorder %v3208_v9, %v3228_v16  ;;  %v1869_v55 = vsel %vm141_vm6, 1.0, %v3162_v1  ;;  %2686 = vmatpush3.bf16.msk.msra.mxu0 %vm3312_vm15, %v4186_v24 }
  0x26   :  { %v4243_v54 = vsel %vm3350_vm7, 4294967295, %v4242_v54  ;;  %v3360_v56 = vsub.f32 %v1852_v52, %v1852_v52  ;;  %v3362_v57 = vsub.f32 %v1853_v53, %v1853_v53  ;;  %v1870_v58 = vsel %vm142_vm8, 1.0, %v3162_v1  ;;  %vm3365_vm10 = vmpackc.low %vm142_vm8, %vm141_vm6  ;;  %2878 = vmatpush3.bf16.msk.msra.mxu1 %vm3329_vm1, %v4186_v24  ;;  %2688 = vmatprep.subr.msk.bf16.mxu0 %vm3350_vm7, %v4186_v24 }
  0x27   :  { %4244 = vst [vmem:[#allocation13_spill] sm:$0xff] %v4243_v54  ;;  %v4246_v59 = vsel %vm3365_vm10, 4294967295, %v4245_v59  ;;  %v3369_v60 = vsub.f32 %v1869_v55, %v1869_v55  ;;  %v3377_v61 = vsub.f32 %v1870_v58, %v1870_v58  ;;  %vm91_vm12 = vcmp.eq.s32.totalorder %v3210_v10, %v3223_v15  ;;  %2880 = vmatprep.subr.msk.bf16.mxu1 %vm3365_vm10, %v4186_v24 }
  0x28   :  { %4247 = vst [vmem:[#allocation14_spill] sm:$0xff] %v4246_v59  ;;  %vm92_vm13 = vcmp.eq.s32.totalorder %v3212_v11, %v3223_v15  ;;  %v1854_v63 = vsel %vm91_vm12, 1.0, %v3162_v1  ;;  %v4248_v3 = vmov 0  ;;  %vm143_vm0 = vcmp.eq.s32.totalorder %v3210_v10, %v3228_v16 }
  0x29   :  { %v1855_v2 = vsel %vm92_vm13, 1.0, %v3162_v1  ;;  %vm3391_vm14 = vmpackc.low %vm92_vm13, %vm91_vm12  ;;  %vm144_vm2 = vcmp.eq.s32.totalorder %v3212_v11, %v3228_v16  ;;  %v3399_v4 = vsub.f32 %v1854_v63, %v1854_v63  ;;  %v1871_v6 = vsel %vm143_vm0, 1.0, %v3162_v1  ;;  %2690 = vmatpush3.bf16.msk.msra.mxu0 %vm3350_vm7, %v4186_v24 }
  0x2a   :  { %v4249_v3 = vsel %vm3391_vm14, 4294967295, %v4248_v3  ;;  %v3401_v5 = vsub.f32 %v1855_v2, %v1855_v2  ;;  %v1872_v7 = vsel %vm144_vm2, 1.0, %v3162_v1  ;;  %vm3405_vm3 = vmpackc.low %vm144_vm2, %vm143_vm0  ;;  %v4251_v8 = vmov 0  ;;  %2882 = vmatpush3.bf16.msk.msra.mxu1 %vm3365_vm10, %v4186_v24  ;;  %2692 = vmatprep.subr.msk.bf16.mxu0 %vm3391_vm14, %v4186_v24  ;;  %v57_v2 = vld [vmem:[#allocation5 + $0x8] sm:$0xff] }
  0x2b   :  { %4250 = vst [vmem:[#allocation15_spill] sm:$0xff] %v4249_v3  ;;  %v4252_v8 = vsel %vm3405_vm3, 4294967295, %v4251_v8  ;;  %v3412_v9 = vsub.f32 %v1871_v6, %v1871_v6  ;;  %v3414_v10 = vsub.f32 %v1872_v7, %v1872_v7  ;;  %vm93_vm6 = vcmp.eq.s32.totalorder %v3214_v12, %v3223_v15  ;;  %2884 = vmatprep.subr.msk.bf16.mxu1 %vm3405_vm3, %v4186_v24 }
  0x2c   :  { %4253 = vst [vmem:[#allocation16_spill] sm:$0xff] %v4252_v8  ;;  %vm94_vm8 = vcmp.eq.s32.totalorder %v3216_v13, %v3223_v15  ;;  %v1856_v11 = vsel %vm93_vm6, 1.0, %v3162_v1  ;;  %vm145_vm12 = vcmp.eq.s32.totalorder %v3214_v12, %v3228_v16  ;;  %vm146_vm13 = vcmp.eq.s32.totalorder %v3216_v13, %v3228_v16 }
  0x2d   :  { %v1857_v19 = vsel %vm94_vm8, 1.0, %v3162_v1  ;;  %vm3435_vm0 = vmpackc.low %vm94_vm8, %vm93_vm6  ;;  %v4254_v20 = vmov 0  ;;  %v3439_v22 = vsub.f32 %v1856_v11, %v1856_v11  ;;  %v1873_v31 = vsel %vm145_vm12, 1.0, %v3162_v1  ;;  %2694 = vmatpush3.bf16.msk.msra.mxu0 %vm3391_vm14, %v4186_v24 }
  0x2e   :  { %v4255_v20 = vsel %vm3435_vm0, 4294967295, %v4254_v20  ;;  %v3441_v23 = vsub.f32 %v1857_v19, %v1857_v19  ;;  %v1874_v32 = vsel %vm146_vm13, 1.0, %v3162_v1  ;;  %vm3445_vm2 = vmpackc.low %vm146_vm13, %vm145_vm12  ;;  %v4257_v12 = vmov 0  ;;  %2886 = vmatpush3.bf16.msk.msra.mxu1 %vm3405_vm3, %v4186_v24  ;;  %2696 = vmatprep.subr.msk.bf16.mxu0 %vm3435_vm0, %v4186_v24 }
  0x2f   :  { %4256 = vst [vmem:[#allocation17_spill] sm:$0xff] %v4255_v20  ;;  %v4258_v12 = vsel %vm3445_vm2, 4294967295, %v4257_v12  ;;  %v3449_v13 = vsub.f32 %v1873_v31, %v1873_v31  ;;  %v3451_v34 = vsub.f32 %v1874_v32, %v1874_v32  ;;  %vm95_vm6 = vcmp.eq.s32.totalorder %v3218_v14, %v3223_v15  ;;  %2888 = vmatprep.subr.msk.bf16.mxu1 %vm3445_vm2, %v4186_v24 }
  0x30   :  { %4259 = vst [vmem:[#allocation18_spill] sm:$0xff] %v4258_v12  ;;  %vm96_vm8 = vcmp.eq.s32.totalorder %v3230_v17, %v3223_v15  ;;  %v1858_v37 = vsel %vm95_vm6, 1.0, %v3162_v1  ;;  %vm147_vm12 = vcmp.eq.s32.totalorder %v3218_v14, %v3228_v16  ;;  %vm148_vm13 = vcmp.eq.s32.totalorder %v3230_v17, %v3228_v16 }
  0x31   :  { %v1859_v41 = vsel %vm96_vm8, 1.0, %v3162_v1  ;;  %v3472_v42 = vsub.f32 %v1858_v37, %v1858_v37  ;;  %v1875_v47 = vsel %vm147_vm12, 1.0, %v3162_v1  ;;  %v1876_v52 = vsel %vm148_vm13, 1.0, %v3162_v1  ;;  %vm3481_vm14 = vmpackc.low %vm96_vm8, %vm95_vm6  ;;  %2698 = vmatpush3.bf16.msk.msra.mxu0 %vm3435_vm0, %v4186_v24 }
  0x32   :  { %v3474_v44 = vsub.f32 %v1859_v41, %v1859_v41  ;;  %v4260_v14 = vmov 0  ;;  %v3485_v17 = vsub.f32 %v1875_v47, %v1875_v47  ;;  %v3487_v53 = vsub.f32 %v1876_v52, %v1876_v52  ;;  %vm3493_vm7 = vmpackc.low %vm148_vm13, %vm147_vm12  ;;  %2890 = vmatpush3.bf16.msk.msra.mxu1 %vm3445_vm2, %v4186_v24  ;;  %2700 = vmatprep.subr.msk.bf16.mxu0 %vm3481_vm14, %v4186_v24 }
  0x33   :  { %v4261_v14 = vsel %vm3481_vm14, 4294967295, %v4260_v14  ;;  %vm97_vm3 = vcmp.eq.s32.totalorder %v3232_v18, %v3223_v15  ;;  %vm98_vm10 = vcmp.eq.s32.totalorder %v3270_v30, %v3223_v15  ;;  %v4263_v55 = vmov 0  ;;  %2892 = vmatprep.subr.msk.bf16.mxu1 %vm3493_vm7, %v4186_v24 }
  0x34   :  { %4262 = vst [vmem:[#allocation19_spill] sm:$0xff] %v4261_v14  ;;  %v4264_v55 = vsel %vm3493_vm7, 4294967295, %v4263_v55  ;;  %v1860_v58 = vsel %vm97_vm3, 1.0, %v3162_v1  ;;  %v1861_v63 = vsel %vm98_vm10, 1.0, %v3162_v1  ;;  %vm149_vm6 = vcmp.eq.s32.totalorder %v3232_v18, %v3228_v16  ;;  %vm3548_vm12 = vmpackc.low %vm98_vm10, %vm97_vm3 }
  0x35   :  { %4265 = vst [vmem:[#allocation20_spill] sm:$0xff] %v4264_v55  ;;  %vm150_vm8 = vcmp.eq.s32.totalorder %v3270_v30, %v3228_v16  ;;  %v3512_v6 = vsub.f32 %v1860_v58, %v1860_v58  ;;  %v3514_v7 = vsub.f32 %v1861_v63, %v1861_v63  ;;  %v1877_v11 = vsel %vm149_vm6, 1.0, %v3162_v1  ;;  %2702 = vmatpush3.bf16.msk.msra.mxu0 %vm3481_vm14, %v4186_v24 }
  0x36   :  { %v1878_v19 = vsel %vm150_vm8, 1.0, %v3162_v1  ;;  %v3530_v31 = vsub.f32 %v1877_v11, %v1877_v11  ;;  %v3536_v37 = vsub.f32 %v3346_v51, %v3384_v62  ;;  %v4165_v41 = vand.u32 4294901760, %v3249_v25  ;;  %vm3563_vm13 = vmpackc.low %vm150_vm8, %vm149_vm6  ;;  %2894 = vmatpush3.bf16.msk.msra.mxu1 %vm3493_vm7, %v4186_v24  ;;  %2704 = vmatprep.subr.msk.bf16.mxu0 %vm3548_vm12, %v4186_v24 }
  0x37   :  { %v3532_v32 = vsub.f32 %v1878_v19, %v1878_v19  ;;  %v4266_v1 = vmov 0  ;;  %v4166_v47 = vand.u32 4294901760, %v3251_v26  ;;  %v4167_v51 = vand.u32 4294901760, %v3257_v28  ;;  %2896 = vmatprep.subr.msk.bf16.mxu1 %vm3563_vm13, %v4186_v24 }
  0x38   :  { %v4267_v1 = vsel %vm3548_vm12, 4294967295, %v4266_v1  ;;  %v4168_v52 = vand.u32 4294901760, %v3259_v29  ;;  %v3555_v58 = vand.u32 4294901760, %v57_v2  ;;  %v4269_v15 = vmov 0 }
  0x39   :  { %4268 = vst [vmem:[#allocation21_spill] sm:$0xff] %v4267_v1  ;;  %v4270_v15 = vsel %vm3563_vm13, 4294967295, %v4269_v15  ;;  %v3568_v63 = vand.u32 4294901760, %v3536_v37  ;;  %v308_v11 = vsub.f32 %v3249_v25, %v4165_v41  ;;  %v4183_v19 = vand.u32 4294901760, %v3286_v35  ;;  %2706 = vmatpush3.bf16.msk.msra.mxu0 %vm3548_vm12, %v4186_v24 }
  0x3a   :  { %4271 = vst [vmem:[#allocation22_spill] sm:$0xff] %v4270_v15  ;;  %v315_v16 = vsub.f32 %v3251_v26, %v4166_v47  ;;  %v1078_v18 = vsub.f32 %v3257_v28, %v4167_v51  ;;  %v1085_v30 = vsub.f32 %v3259_v29, %v4168_v52  ;;  %v3588_v41 = vsub.f32 %v57_v2, %v3555_v58 }
  0x3b   :  { %4272 = vst [vmem:[#allocation23_spill] sm:$0xff] %v3568_v63  ;;  %v267_v47 = vsub.f32 %v3536_v37, %v3568_v63  ;;  %v309_v0 = vand.u32 4294901760, %v308_v11  ;;  %v322_v51 = vsub.f32 %v3286_v35, %v4183_v19  ;;  %v4273_v52 = vand.u32 4294901760, %v3288_v36  ;;  %2898 = vmatpush3.bf16.msk.msra.mxu1 %vm3563_vm13, %v4186_v24 }
  0x3c   :  { %v316_v55 = vand.u32 4294901760, %v315_v16  ;;  %v1079_v14 = vand.u32 4294901760, %v1078_v18  ;;  %v1086_v12 = vand.u32 4294901760, %v1085_v30  ;;  %v3608_v20 = vand.u32 4294901760, %v3588_v41 }
  0x3d   :  { %v329_v2 = vsub.f32 %v3288_v36, %v4273_v52  ;;  %v268_v8 = vand.u32 4294901760, %v267_v47  ;;  %v323_v11 = vand.u32 4294901760, %v322_v51  ;;  %v4190_v59 = vand.u32 4294901760, %v3295_v39 }
  0x3e   :  { %4274 = vst [vmem:[#allocation24_spill] sm:$0xff] %v3608_v20  ;;  %v2707_v52 = vpack.c.bf16 %v316_v55, %v309_v0  ;;  %v2899_v19 = vpack.c.bf16 %v1086_v12, %v1079_v14  ;;  %v277_v54 = vsub.f32 %v3588_v41, %v3608_v20  ;;  %v4188_v16 = vand.u32 4294901760, %v3300_v40 }
  0x3f   :  { %v330_v3 = vand.u32 4294901760, %v329_v2  ;;  %2251 = vmatprep.mubr.f32.mxu0 %v268_v8  ;;  %v1092_v51 = vsub.f32 %v3295_v39, %v4190_v59  ;;  %v4189_v18 = vand.u32 4294901760, %v3324_v45  ;;  %v4191_v0 = vand.u32 4294901760, %v3326_v46  ;;  %2479 = vmatprep.mubr.f32.mxu1 %v268_v8 }
  0x40   :  { %2708 = vmatprep.subr.bf16.mxu0 %v2707_v52  ;;  %v278_v12 = vand.u32 4294901760, %v277_v54  ;;  %v1099_v14 = vsub.f32 %v3300_v40, %v4188_v16  ;;  %v4194_v55 = vand.u32 4294901760, %v3333_v49  ;;  %v4195_v30 = vand.u32 4294901760, %v3338_v50  ;;  %2900 = vmatprep.subr.bf16.mxu1 %v2899_v19 }
  0x41   :  { %v2711_v47 = vpack.c.bf16 %v330_v3, %v323_v11  ;;  %v1093_v3 = vand.u32 4294901760, %v1092_v51  ;;  %v336_v2 = vsub.f32 %v3324_v45, %v4189_v18  ;;  %v343_v11 = vsub.f32 %v3326_v46, %v4191_v0 }
  0x42   :  { %v4200_v54 = vand.u32 4294901760, %v3360_v56  ;;  %2252 = vmatmul.mubr.f32.vlgmr.msra.gmra.mrb[0].mxu0 %v278_v12  ;;  %2480 = vmatmul.mubr.f32.vlgmr.msra.gmra.mrb[0].mxu1 %v278_v12  ;;  %v1100_v8 = vand.u32 4294901760, %v1099_v14  ;;  %v1106_v24 = vsub.f32 %v3333_v49, %v4194_v55  ;;  %v1113_v51 = vsub.f32 %v3338_v50, %v4195_v30 }
  0x43   :  { %v4207_v16 = vand.u32 4294901760, %v3362_v57  ;;  %2710 = vmatpush3.bf16.msra.mxu0 %v2707_v52  ;;  %2902 = vmatpush3.bf16.msra.mxu1 %v2899_v19  ;;  %v337_v18 = vand.u32 4294901760, %v336_v2  ;;  %v344_v59 = vand.u32 4294901760, %v343_v11  ;;  %v4204_v12 = vand.u32 4294901760, %v3369_v60 }
  0x44   :  { %v350_v0 = vsub.f32 %v3360_v56, %v4200_v54  ;;  %2712 = vmatprep.subr.bf16.mxu0 %v2711_v47  ;;  %v2903_v14 = vpack.c.bf16 %v1100_v8, %v1093_v3  ;;  %v1107_v20 = vand.u32 4294901760, %v1106_v24  ;;  %v1114_v55 = vand.u32 4294901760, %v1113_v51 }
  0x45   :  { %v357_v30 = vsub.f32 %v3362_v57, %v4207_v16  ;;  %v2715_v15 = vpack.c.bf16 %v344_v59, %v337_v18  ;;  %v1120_v19 = vsub.f32 %v3369_v60, %v4204_v12  ;;  %v4203_v52 = vand.u32 4294901760, %v3377_v61 }
  0x46   :  { %v351_v1 = vand.u32 4294901760, %v350_v0  ;;  %2904 = vmatprep.subr.bf16.mxu1 %v2903_v14  ;;  %v2907_v2 = vpack.c.bf16 %v1114_v55, %v1107_v20  ;;  %v4201_v54 = vand.u32 4294901760, %v3399_v4  ;;  %v4202_v24 = vand.u32 4294901760, %v3401_v5 }
  0x47   :  { %v358_v11 = vand.u32 4294901760, %v357_v30  ;;  %2714 = vmatpush3.bf16.msra.mxu0 %v2711_v47  ;;  %2906 = vmatpush3.bf16.msra.mxu1 %v2903_v14  ;;  %v1121_v3 = vand.u32 4294901760, %v1120_v19  ;;  %v1127_v59 = vsub.f32 %v3377_v61, %v4203_v52  ;;  %v4205_v18 = vand.u32 4294901760, %v3412_v9 }
  0x48   :  { %v4206_v0 = vand.u32 4294901760, %v3414_v10  ;;  %2716 = vmatprep.subr.bf16.mxu0 %v2715_v15  ;;  %2908 = vmatprep.subr.bf16.mxu1 %v2907_v2  ;;  %v364_v20 = vsub.f32 %v3399_v4, %v4201_v54  ;;  %v371_v47 = vsub.f32 %v3401_v5, %v4202_v24  ;;  %v4208_v55 = vand.u32 4294901760, %v3439_v22 }
  0x49   :  { %v2719_v8 = vpack.c.bf16 %v358_v11, %v351_v1  ;;  %v1128_v30 = vand.u32 4294901760, %v1127_v59  ;;  %v1134_v51 = vsub.f32 %v3412_v9, %v4205_v18  ;;  %v4213_v1 = vand.u32 4294901760, %v3441_v23 }
  0x4a   :  { %v1141_v14 = vsub.f32 %v3414_v10, %v4206_v0  ;;  %v365_v19 = vand.u32 4294901760, %v364_v20  ;;  %v372_v11 = vand.u32 4294901760, %v371_v47  ;;  %v378_v54 = vsub.f32 %v3439_v22, %v4208_v55  ;;  %v58_v55 = vld [vmem:[#allocation5 + $0x10] sm:$0xff] }
  0x4b   :  { %v4212_v24 = vand.u32 4294901760, %v3449_v13  ;;  %2718 = vmatpush3.bf16.msra.mxu0 %v2715_v15  ;;  %2910 = vmatpush3.bf16.msra.mxu1 %v2907_v2  ;;  %v2911_v59 = vpack.c.bf16 %v1128_v30, %v1121_v3  ;;  %v1135_v52 = vand.u32 4294901760, %v1134_v51  ;;  %v385_v18 = vsub.f32 %v3441_v23, %v4213_v1 }
  0x4c   :  { %v1142_v12 = vand.u32 4294901760, %v1141_v14  ;;  %2720 = vmatprep.subr.bf16.mxu0 %v2719_v8  ;;  %v2723_v0 = vpack.c.bf16 %v372_v11, %v365_v19  ;;  %v379_v16 = vand.u32 4294901760, %v378_v54  ;;  %v4209_v47 = vand.u32 4294901760, %v3451_v34 }
  0x4d   :  { %v1148_v20 = vsub.f32 %v3449_v13, %v4212_v24  ;;  %2912 = vmatprep.subr.bf16.mxu1 %v2911_v59  ;;  %v386_v2 = vand.u32 4294901760, %v385_v18  ;;  %v4210_v3 = vand.u32 4294901760, %v3472_v42  ;;  %v4211_v30 = vand.u32 4294901760, %v3474_v44  ;;  %v59_v24 = vld [vmem:[#allocation5 + $0x18] sm:$0xff] }
  0x4e   :  { %v2915_v15 = vpack.c.bf16 %v1142_v12, %v1135_v52  ;;  %v1155_v14 = vsub.f32 %v3451_v34, %v4209_v47  ;;  %v4216_v54 = vand.u32 4294901760, %v3485_v17  ;;  %v4217_v19 = vand.u32 4294901760, %v3487_v53 }
  0x4f   :  { %v1149_v51 = vand.u32 4294901760, %v1148_v20  ;;  %2722 = vmatpush3.bf16.msra.mxu0 %v2719_v8  ;;  %2914 = vmatpush3.bf16.msra.mxu1 %v2911_v59  ;;  %v2727_v11 = vpack.c.bf16 %v386_v2, %v379_v16  ;;  %v392_v12 = vsub.f32 %v3472_v42, %v4210_v3  ;;  %v399_v52 = vsub.f32 %v3474_v44, %v4211_v30 }
  0x50   :  { %v3700_v18 = vand.u32 4294901760, %v58_v55  ;;  %2724 = vmatprep.subr.bf16.mxu0 %v2723_v0  ;;  %2916 = vmatprep.subr.bf16.mxu1 %v2915_v15  ;;  %v1156_v20 = vand.u32 4294901760, %v1155_v14  ;;  %v1162_v47 = vsub.f32 %v3485_v17, %v4216_v54  ;;  %v1169_v16 = vsub.f32 %v3487_v53, %v4217_v19 }
  0x51   :  { %v4221_v8 = vand.u32 4294901760, %v3512_v6  ;;  %v393_v59 = vand.u32 4294901760, %v392_v12  ;;  %v400_v2 = vand.u32 4294901760, %v399_v52  ;;  %v4220_v30 = vand.u32 4294901760, %v3514_v7 }
  0x52   :  { %v3710_v3 = vsub.f32 %v58_v55, %v3700_v18  ;;  %v2919_v1 = vpack.c.bf16 %v1156_v20, %v1149_v51  ;;  %v1163_v14 = vand.u32 4294901760, %v1162_v47  ;;  %v1170_v63 = vand.u32 4294901760, %v1169_v16 }
  0x53   :  { %v406_v54 = vsub.f32 %v3512_v6, %v4221_v8  ;;  %2726 = vmatpush3.bf16.msra.mxu0 %v2723_v0  ;;  %2918 = vmatpush3.bf16.msra.mxu1 %v2915_v15  ;;  %v2731_v19 = vpack.c.bf16 %v400_v2, %v393_v59  ;;  %v413_v55 = vsub.f32 %v3514_v7, %v4220_v30  ;;  %v1175_v12 = vand.u32 4294901760, %v3530_v31 }
  0x54   :  { %v3717_v48 = vand.u32 4294901760, %v3710_v3  ;;  %2728 = vmatprep.subr.bf16.mxu0 %v2727_v11  ;;  %2920 = vmatprep.subr.bf16.mxu1 %v2919_v1  ;;  %v2923_v47 = vpack.c.bf16 %v1170_v63, %v1163_v14  ;;  %v1182_v52 = vand.u32 4294901760, %v3532_v32  ;;  %v3724_v20 = vand.u32 4294901760, %v59_v24 }
  0x55   :  { %v407_v51 = vand.u32 4294901760, %v406_v54  ;;  %v414_v15 = vand.u32 4294901760, %v413_v55  ;;  %v1176_v16 = vsub.f32 %v3530_v31, %v1175_v12 }
  0x56   :  { %4275 = vst [vmem:[#allocation25_spill] sm:$0xff] %v3717_v48  ;;  %v287_v0 = vsub.f32 %v3710_v3, %v3717_v48  ;;  %v1183_v59 = vsub.f32 %v3532_v32, %v1182_v52  ;;  %v3731_v2 = vsub.f32 %v59_v24, %v3724_v20  ;;  %v2739_v24 = vpack.c.bf16 %v3251_v26, %v3249_v25 }
  0x57   :  { %2730 = vmatpush3.bf16.msra.mxu0 %v2727_v11  ;;  %2922 = vmatpush3.bf16.msra.mxu1 %v2919_v1  ;;  %v1177_v63 = vand.u32 4294901760, %v1176_v16  ;;  %v2735_v54 = vpack.c.bf16 %v414_v15, %v407_v51  ;;  %v2931_v1 = vpack.c.bf16 %v3259_v29, %v3257_v28  ;;  %v2743_v51 = vpack.c.bf16 %v3288_v36, %v3286_v35 }
  0x58   :  { %v288_v30 = vand.u32 4294901760, %v287_v0  ;;  %2732 = vmatprep.subr.bf16.mxu0 %v2731_v19  ;;  %2924 = vmatprep.subr.bf16.mxu1 %v2923_v47  ;;  %v1184_v14 = vand.u32 4294901760, %v1183_v59  ;;  %v3734_v8 = vand.u32 4294901760, %v3731_v2  ;;  %v4277_v0 = vand.u32 4294901760, %v3249_v25 }
  0x59   :  { %v4279_v15 = vand.u32 4294901760, %v3257_v28  ;;  %v4280_v16 = vand.u32 4294901760, %v3259_v29  ;;  %v4284_v25 = vand.u32 4294901760, %v3300_v40  ;;  %v4286_v28 = vand.u32 4294901760, %v3326_v46 }
  0x5a   :  { %4276 = vst [vmem:[#allocation26_spill] sm:$0xff] %v3734_v8  ;;  %2254 = vmatprep.mubr.f32.mxu0 %v288_v30  ;;  %2482 = vmatprep.mubr.f32.mxu1 %v288_v30  ;;  %v2927_v55 = vpack.c.bf16 %v1184_v14, %v1177_v63  ;;  %v297_v48 = vsub.f32 %v3731_v2, %v3734_v8  ;;  %v4282_v63 = vand.u32 4294901760, %v3288_v36  ;;  %v4283_v8 = vand.u32 4294901760, %v3295_v39 }
  0x5b   :  { %2734 = vmatpush3.bf16.msra.mxu0 %v2731_v19  ;;  %2926 = vmatpush3.bf16.msra.mxu1 %v2923_v47  ;;  %v2935_v30 = vpack.c.bf16 %v3300_v40, %v3295_v39  ;;  %v4278_v19 = vand.u32 4294901760, %v3251_v26  ;;  %v3756_v59 = vpack.c.bf16 %v4280_v16, %v4279_v15  ;;  %v4285_v26 = vand.u32 4294901760, %v3324_v45 }
  0x5c   :  { %2736 = vmatprep.subr.bf16.mxu0 %v2735_v54  ;;  %2928 = vmatprep.subr.bf16.mxu1 %v2927_v55  ;;  %v298_v11 = vand.u32 4294901760, %v297_v48  ;;  %v4281_v48 = vand.u32 4294901760, %v3286_v35  ;;  %v3768_v43 = vpack.c.bf16 %v4284_v25, %v4283_v8  ;;  %v4287_v29 = vand.u32 4294901760, %v3333_v49 }
  0x5d   :  { %v3750_v47 = vpack.c.bf16 %v4278_v19, %v4277_v0  ;;  %v3774_v0 = vpack.c.bf16 %v4286_v28, %v4285_v26  ;;  %v4288_v35 = vand.u32 4294901760, %v3338_v50  ;;  %v4289_v39 = vand.u32 4294901760, %v3360_v56 }
  0x5e   :  { %v3762_v14 = vpack.c.bf16 %v4282_v63, %v4281_v48  ;;  %2255 = vmatmul.mubr.f32.gmra.mrb[2].mxu0 %v298_v11  ;;  %2483 = vmatmul.mubr.f32.gmra.mrb[2].mxu1 %v298_v11  ;;  %v4290_v40 = vand.u32 4294901760, %v3362_v57  ;;  %v4291_v19 = vand.u32 4294901760, %v3369_v60  ;;  %v4292_v15 = vand.u32 4294901760, %v3377_v61 }
  0x5f   :  { %v3780_v36 = vpack.c.bf16 %v4288_v35, %v4287_v29  ;;  %2738 = vmatpush3.bf16.msra.mxu0 %v2735_v54  ;;  %2930 = vmatpush3.bf16.msra.mxu1 %v2927_v55  ;;  %v4293_v11 = vand.u32 4294901760, %v3399_v4  ;;  %v4294_v48 = vand.u32 4294901760, %v3401_v5  ;;  %v4295_v25 = vand.u32 4294901760, %v3412_v9 }
  0x60   :  { %v3786_v8 = vpack.c.bf16 %v4290_v40, %v4289_v39  ;;  %v3792_v16 = vpack.c.bf16 %v4292_v15, %v4291_v19  ;;  %v4296_v26 = vand.u32 4294901760, %v3414_v10  ;;  %v4297_v29 = vand.u32 4294901760, %v3439_v22  ;;  %2289 = vmatprep.mubr.f32.mxu0 %v3384_v62  ;;  %2740 = vmatprep.subr.bf16.mxu0 %v2739_v24 }
  0x61   :  { %v3798_v63 = vpack.c.bf16 %v4294_v48, %v4293_v11  ;;  %v4298_v35 = vand.u32 4294901760, %v3441_v23  ;;  %v4299_v54 = vand.u32 4294901760, %v3449_v13  ;;  %v4300_v55 = vand.u32 4294901760, %v3451_v34  ;;  %2517 = vmatprep.mubr.f32.mxu1 %v3384_v62  ;;  %2932 = vmatprep.subr.bf16.mxu1 %v2931_v1 }
  0x62   :  { %v3804_v28 = vpack.c.bf16 %v4296_v26, %v4295_v25  ;;  %v4301_v19 = vand.u32 4294901760, %v3472_v42  ;;  %v4302_v15 = vand.u32 4294901760, %v3474_v44  ;;  %v4303_v48 = vand.u32 4294901760, %v3485_v17  ;;  %2290 = vmatmul.mubr.f32.vlgmr.msra.gmra.mrb[0].mxu0 %v3555_v58  ;;  %2518 = vmatmul.mubr.f32.vlgmr.msra.gmra.mrb[0].mxu1 %v3555_v58 }
  0x63   :  { %v3810_v39 = vpack.c.bf16 %v4298_v35, %v4297_v29  ;;  %v3817_v40 = vpack.c.bf16 %v4300_v55, %v4299_v54  ;;  %v4304_v25 = vand.u32 4294901760, %v3487_v53  ;;  %v4305_v29 = vand.u32 4294901760, %v3512_v6  ;;  %2742 = vmatpush3.bf16.msra.mxu0 %v2739_v24  ;;  %2934 = vmatpush3.bf16.msra.mxu1 %v2931_v1 }
  0x64   :  { %v3823_v11 = vpack.c.bf16 %v4302_v15, %v4301_v19  ;;  %v4306_v35 = vand.u32 4294901760, %v3514_v7  ;;  %v3838_v55 = vpack.c.bf16 %v1182_v52, %v1175_v12  ;;  %2744 = vmatprep.subr.bf16.mxu0 %v2743_v51  ;;  %2936 = vmatprep.subr.bf16.mxu1 %v2935_v30  ;;  %v2747_v19 = vpack.c.bf16 %v3326_v46, %v3324_v45 }
  0x65   :  { %v3829_v26 = vpack.c.bf16 %v4304_v25, %v4303_v48  ;;  %v2939_v15 = vpack.c.bf16 %v3338_v50, %v3333_v49  ;;  %2292 = vmatprep.mubr.f32.mxu0 %v3700_v18  ;;  %2520 = vmatprep.mubr.f32.mxu1 %v3700_v18  ;;  %v2751_v12 = vpack.c.bf16 %v3362_v57, %v3360_v56 }
  0x66   :  { %v3836_v54 = vpack.c.bf16 %v4306_v35, %v4305_v29  ;;  %2293 = vmatmul.mubr.f32.gmra.mrb[2].mxu0 %v3724_v20  ;;  %2521 = vmatmul.mubr.f32.gmra.mrb[2].mxu1 %v3724_v20  ;;  %v2943_v45 = vpack.c.bf16 %v3377_v61, %v3369_v60  ;;  %v2755_v46 = vpack.c.bf16 %v3401_v5, %v3399_v4  ;;  %v4307_v5 = vmov 1.0|1.0  }
  0x67   :  { %2746 = vmatpush3.bf16.msra.mxu0 %v2743_v51  ;;  %2938 = vmatpush3.bf16.msra.mxu1 %v2935_v30  ;;  %v2947_v49 = vpack.c.bf16 %v3414_v10, %v3412_v9  ;;  %v2759_v50 = vpack.c.bf16 %v3441_v23, %v3439_v22  ;;  %v2951_v56 = vpack.c.bf16 %v3451_v34, %v3449_v13  ;;  %v4310_v22 = vld [vmem:[#allocation23_spill] sm:$0xff]  ;;  %v4311_v23 = vld [vmem:[#allocation13_spill] sm:$0xff]  ;;  %v4313_v13 = vld [vmem:[#allocation14_spill] sm:$0xff] }
  0x68   :  { %2748 = vmatprep.subr.bf16.mxu0 %v2747_v19  ;;  %2940 = vmatprep.subr.bf16.mxu1 %v2939_v15  ;;  %v2763_v57 = vpack.c.bf16 %v3474_v44, %v3472_v42  ;;  %v2955_v60 = vpack.c.bf16 %v3487_v53, %v3485_v17  ;;  %v2767_v61 = vpack.c.bf16 %v3514_v7, %v3512_v6  ;;  %v4315_v34 = vld [vmem:[#allocation15_spill] sm:$0xff]  ;;  %v4317_v42 = vld [vmem:[#allocation16_spill] sm:$0xff] }
  0x69   :  { %2327 = vmatprep.mubr.f32.mxu0 %v3536_v37  ;;  %2555 = vmatprep.mubr.f32.mxu1 %v3536_v37  ;;  %v2959_v4 = vpack.c.bf16 %v3532_v32, %v3530_v31  ;;  %vm4312_vm10 = vnez %v4311_v23  ;;  %vm4314_vm3 = vnez %v4313_v13  ;;  %vm4316_vm6 = vnez %v4315_v34  ;;  %v4325_v32 = vld [vmem:[#allocation24_spill] sm:$0xff]  ;;  %v4326_v37 = vld [vmem:[#allocation25_spill] sm:$0xff] }
  0x6a   :  { %vm4318_vm8 = vnez %v4317_v42 }
  0x6b   :  { %2750 = vmatpush3.bf16.msra.mxu0 %v2747_v19  ;;  %2942 = vmatpush3.bf16.msra.mxu1 %v2939_v15 }
  0x6c   :  { %2752 = vmatprep.subr.bf16.mxu0 %v2751_v12  ;;  %2944 = vmatprep.subr.bf16.mxu1 %v2943_v45 }
  0x6f   :  { %2754 = vmatpush3.bf16.msra.mxu0 %v2751_v12  ;;  %2946 = vmatpush3.bf16.msra.mxu1 %v2943_v45 }
  0x70   :  { %2756 = vmatprep.subr.bf16.mxu0 %v2755_v46  ;;  %2948 = vmatprep.subr.bf16.mxu1 %v2947_v49 }
  0x73   :  { %2758 = vmatpush3.bf16.msra.mxu0 %v2755_v46  ;;  %2950 = vmatpush3.bf16.msra.mxu1 %v2947_v49 }
  0x74   :  { %2760 = vmatprep.subr.bf16.mxu0 %v2759_v50  ;;  %2952 = vmatprep.subr.bf16.mxu1 %v2951_v56 }
  0x77   :  { %2762 = vmatpush3.bf16.msra.mxu0 %v2759_v50  ;;  %2954 = vmatpush3.bf16.msra.mxu1 %v2951_v56 }
  0x78   :  { %2764 = vmatprep.subr.bf16.mxu0 %v2763_v57  ;;  %2956 = vmatprep.subr.bf16.mxu1 %v2955_v60 }
  0x7b   :  { %2766 = vmatpush3.bf16.msra.mxu0 %v2763_v57  ;;  %2958 = vmatpush3.bf16.msra.mxu1 %v2955_v60 }
  0x7c   :  { %2768 = vmatprep.subr.bf16.mxu0 %v2767_v61  ;;  %2960 = vmatprep.subr.bf16.mxu1 %v2959_v4 }
  0x7f   :  { %2770 = vmatpush3.bf16.msra.mxu0 %v2767_v61  ;;  %2962 = vmatpush3.bf16.msra.mxu1 %v2959_v4 }
  0x80   :  { %2772 = vmatprep.subr.msk.bf16.mxu0 %vm3240_vm4, %v4307_v5  ;;  %2964 = vmatprep.subr.msk.bf16.mxu1 %vm3253_vm5, %v4307_v5 }
  0x82   :  { %2328 = vmatmul.mubr.f32.vlgmr.msra.gmra.mrb[0].mxu0 %v3588_v41  ;;  %2556 = vmatmul.mubr.f32.vlgmr.msra.gmra.mrb[0].mxu1 %v3588_v41  ;;  %v4327_v41 = vld [vmem:[#allocation26_spill] sm:$0xff] }
  0x83   :  { %2774 = vmatpush3.bf16.msk.msra.mxu0 %vm3240_vm4, %v4307_v5  ;;  %2966 = vmatpush3.bf16.msk.msra.mxu1 %vm3253_vm5, %v4307_v5 }
  0x84   :  { %2776 = vmatprep.subr.msk.bf16.mxu0 %vm3277_vm9, %v4307_v5  ;;  %2968 = vmatprep.subr.msk.bf16.mxu1 %vm3291_vm11, %v4307_v5 }
  0x85   :  { %2330 = vmatprep.mubr.f32.mxu0 %v3710_v3  ;;  %2558 = vmatprep.mubr.f32.mxu1 %v3710_v3 }
  0x86   :  { %2331 = vmatmul.mubr.f32.gmra.mrb[2].mxu0 %v3731_v2  ;;  %2559 = vmatmul.mubr.f32.gmra.mrb[2].mxu1 %v3731_v2 }
  0x87   :  { %2778 = vmatpush3.bf16.msk.msra.mxu0 %vm3277_vm9, %v4307_v5  ;;  %2970 = vmatpush3.bf16.msk.msra.mxu1 %vm3291_vm11, %v4307_v5 }
  0x88   :  { %2780 = vmatprep.subr.msk.bf16.mxu0 %vm3312_vm15, %v4307_v5  ;;  %2972 = vmatprep.subr.msk.bf16.mxu1 %vm3329_vm1, %v4307_v5 }
  0x89   :  { %2365 = vmatprep.mubr.f32.mxu0 %v4310_v22  ;;  %2593 = vmatprep.mubr.f32.mxu1 %v4310_v22  ;;  %v1767_v22 = vstv %s4151_s0 }
  0x8b   :  { %2782 = vmatpush3.bf16.msk.msra.mxu0 %vm3312_vm15, %v4307_v5  ;;  %2974 = vmatpush3.bf16.msk.msra.mxu1 %vm3329_vm1, %v4307_v5 }
  0x8c   :  { %2784 = vmatprep.subr.msk.bf16.mxu0 %vm4312_vm10, %v4307_v5  ;;  %2976 = vmatprep.subr.msk.bf16.mxu1 %vm4314_vm3, %v4307_v5 }
  0x8f   :  { %2786 = vmatpush3.bf16.msk.msra.mxu0 %vm4312_vm10, %v4307_v5  ;;  %2978 = vmatpush3.bf16.msk.msra.mxu1 %vm4314_vm3, %v4307_v5 }
  0x90   :  { %2788 = vmatprep.subr.msk.bf16.mxu0 %vm4316_vm6, %v4307_v5  ;;  %2980 = vmatprep.subr.msk.bf16.mxu1 %vm4318_vm8, %v4307_v5 }
  0x93   :  { %2790 = vmatpush3.bf16.msk.msra.mxu0 %vm4316_vm6, %v4307_v5  ;;  %2982 = vmatpush3.bf16.msk.msra.mxu1 %vm4318_vm8, %v4307_v5 }
  0x94   :  { %2792 = vmatprep.subr.msk.bf16.mxu0 %vm3435_vm0, %v4307_v5  ;;  %2984 = vmatprep.subr.msk.bf16.mxu1 %vm3445_vm2, %v4307_v5 }
  0x97   :  { %2794 = vmatpush3.bf16.msk.msra.mxu0 %vm3435_vm0, %v4307_v5  ;;  %2986 = vmatpush3.bf16.msk.msra.mxu1 %vm3445_vm2, %v4307_v5 }
  0x98   :  { %2796 = vmatprep.subr.msk.bf16.mxu0 %vm3481_vm14, %v4307_v5  ;;  %2988 = vmatprep.subr.msk.bf16.mxu1 %vm3493_vm7, %v4307_v5 }
  0x9b   :  { %2798 = vmatpush3.bf16.msk.msra.mxu0 %vm3481_vm14, %v4307_v5  ;;  %2990 = vmatpush3.bf16.msk.msra.mxu1 %vm3493_vm7, %v4307_v5 }
  0x9c   :  { %2800 = vmatprep.subr.msk.bf16.mxu0 %vm3548_vm12, %v4307_v5  ;;  %2992 = vmatprep.subr.msk.bf16.mxu1 %vm3563_vm13, %v4307_v5 }
  0x9f   :  { %2802 = vmatpush3.bf16.msk.msra.mxu0 %vm3548_vm12, %v4307_v5  ;;  %2994 = vmatpush3.bf16.msk.msra.mxu1 %vm3563_vm13, %v4307_v5 }
  0xa0   :  { %2804 = vmatprep.subr.bf16.mxu0 %v3750_v47  ;;  %2996 = vmatprep.subr.bf16.mxu1 %v3756_v59 }
  0xa2   :  { %2366 = vmatmul.mubr.f32.vlgmr.msra.gmra.mrb[0].mxu0 %v4325_v32  ;;  %2594 = vmatmul.mubr.f32.vlgmr.msra.gmra.mrb[0].mxu1 %v4325_v32 }
  0xa3   :  { %2806 = vmatpush3.bf16.msra.mxu0 %v3750_v47  ;;  %2998 = vmatpush3.bf16.msra.mxu1 %v3756_v59 }
  0xa4   :  { %2808 = vmatprep.subr.bf16.mxu0 %v3762_v14  ;;  %3000 = vmatprep.subr.bf16.mxu1 %v3768_v43 }
  0xa5   :  { %2368 = vmatprep.mubr.f32.mxu0 %v4326_v37  ;;  %2596 = vmatprep.mubr.f32.mxu1 %v4326_v37  ;;  %v1778_v37 = vld [vmem:[#allocation2] sm:$0xff] (!%p1976_p8) }
  0xa6   :  { %2369 = vmatmul.mubr.f32.gmra.mrb[2].mxu0 %v4327_v41  ;;  %2597 = vmatmul.mubr.f32.gmra.mrb[2].mxu1 %v4327_v41 }
  0xa7   :  { %2810 = vmatpush3.bf16.msra.mxu0 %v3762_v14  ;;  %3002 = vmatpush3.bf16.msra.mxu1 %v3768_v43 }
  0xa8   :  { %2812 = vmatprep.subr.bf16.mxu0 %v3774_v0  ;;  %3004 = vmatprep.subr.bf16.mxu1 %v3780_v36 }
  0xa9   :  { %2403 = vmatprep.mubr.f32.mxu0 %v3384_v62  ;;  %2631 = vmatprep.mubr.f32.mxu1 %v3384_v62 }
  0xab   :  { %2814 = vmatpush3.bf16.msra.mxu0 %v3774_v0  ;;  %3006 = vmatpush3.bf16.msra.mxu1 %v3780_v36 }
  0xac   :  { %2816 = vmatprep.subr.bf16.mxu0 %v3786_v8  ;;  %3008 = vmatprep.subr.bf16.mxu1 %v3792_v16 }
  0xaf   :  { %2818 = vmatpush3.bf16.msra.mxu0 %v3786_v8  ;;  %3010 = vmatpush3.bf16.msra.mxu1 %v3792_v16 }
  0xb0   :  { %2820 = vmatprep.subr.bf16.mxu0 %v3798_v63  ;;  %3012 = vmatprep.subr.bf16.mxu1 %v3804_v28 }
  0xb3   :  { %2822 = vmatpush3.bf16.msra.mxu0 %v3798_v63  ;;  %3014 = vmatpush3.bf16.msra.mxu1 %v3804_v28 }
  0xb4   :  { %2824 = vmatprep.subr.bf16.mxu0 %v3810_v39  ;;  %3016 = vmatprep.subr.bf16.mxu1 %v3817_v40 }
  0xb7   :  { %2826 = vmatpush3.bf16.msra.mxu0 %v3810_v39  ;;  %3018 = vmatpush3.bf16.msra.mxu1 %v3817_v40 }
  0xb8   :  { %2828 = vmatprep.subr.bf16.mxu0 %v3823_v11  ;;  %3020 = vmatprep.subr.bf16.mxu1 %v3829_v26 }
  0xbb   :  { %2830 = vmatpush3.bf16.msra.mxu0 %v3823_v11  ;;  %3022 = vmatpush3.bf16.msra.mxu1 %v3829_v26 }
  0xbc   :  { %2832 = vmatprep.subr.bf16.mxu0 %v3836_v54  ;;  %3024 = vmatprep.subr.bf16.mxu1 %v3838_v55 }
  0xbf   :  { %2834 = vmatpush3.bf16.msra.mxu0 %v3836_v54  ;;  %3026 = vmatpush3.bf16.msra.mxu1 %v3838_v55 }
  0xc0   :  { %2836 = vmatprep.subr.msk.bf16.mxu0 %vm3240_vm4, %v4307_v5  ;;  %3028 = vmatprep.subr.msk.bf16.mxu1 %vm3253_vm5, %v4307_v5 }
  0xc2   :  { %2404 = vmatmul.mubr.f32.vlgmr.msra.gmra.mrb[0].mxu0 %v3555_v58  ;;  %2632 = vmatmul.mubr.f32.vlgmr.msra.gmra.mrb[0].mxu1 %v3555_v58 }
  0xc3   :  { %2838 = vmatpush3.bf16.msk.msra.mxu0 %vm3240_vm4, %v4307_v5  ;;  %3030 = vmatpush3.bf16.msk.msra.mxu1 %vm3253_vm5, %v4307_v5  ;;  %vm1779_vm4 = vcmask (!%p1976_p8), 1040384  }
  0xc4   :  { %2840 = vmatprep.subr.msk.bf16.mxu0 %vm3277_vm9, %v4307_v5  ;;  %3032 = vmatprep.subr.msk.bf16.mxu1 %vm3291_vm11, %v4307_v5 }
  0xc5   :  { %2406 = vmatprep.mubr.f32.mxu0 %v3700_v18  ;;  %2634 = vmatprep.mubr.f32.mxu1 %v3700_v18 }
  0xc6   :  { %2407 = vmatmul.mubr.f32.gmra.mrb[2].mxu0 %v3724_v20  ;;  %2635 = vmatmul.mubr.f32.gmra.mrb[2].mxu1 %v3724_v20 }
  0xc7   :  { %2842 = vmatpush3.bf16.msk.msra.mxu0 %vm3277_vm9, %v4307_v5  ;;  %3034 = vmatpush3.bf16.msk.msra.mxu1 %vm3291_vm11, %v4307_v5 }
  0xc8   :  { %2844 = vmatprep.subr.msk.bf16.mxu0 %vm3312_vm15, %v4307_v5  ;;  %3036 = vmatprep.subr.msk.bf16.mxu1 %vm3329_vm1, %v4307_v5 }
  0xc9   :  { %2441 = vmatprep.mubr.f32.mxu0 %v3384_v62  ;;  %2669 = vmatprep.mubr.f32.mxu1 %v3384_v62 }
  0xcb   :  { %2846 = vmatpush3.bf16.msk.msra.mxu0 %vm3312_vm15, %v4307_v5  ;;  %3038 = vmatpush3.bf16.msk.msra.mxu1 %vm3329_vm1, %v4307_v5 }
  0xcc   :  { %2848 = vmatprep.subr.msk.bf16.mxu0 %vm4312_vm10, %v4307_v5  ;;  %3040 = vmatprep.subr.msk.bf16.mxu1 %vm4314_vm3, %v4307_v5 }
  0xcf   :  { %2850 = vmatpush3.bf16.msk.msra.mxu0 %vm4312_vm10, %v4307_v5  ;;  %3042 = vmatpush3.bf16.msk.msra.mxu1 %vm4314_vm3, %v4307_v5 }
  0xd0   :  { %2852 = vmatprep.subr.msk.bf16.mxu0 %vm4316_vm6, %v4307_v5  ;;  %3044 = vmatprep.subr.msk.bf16.mxu1 %vm4318_vm8, %v4307_v5 }
  0xd3   :  { %2854 = vmatpush3.bf16.msk.msra.mxu0 %vm4316_vm6, %v4307_v5  ;;  %3046 = vmatpush3.bf16.msk.msra.mxu1 %vm4318_vm8, %v4307_v5 }
  0xd4   :  { %2856 = vmatprep.subr.msk.bf16.mxu0 %vm3435_vm0, %v4307_v5  ;;  %3048 = vmatprep.subr.msk.bf16.mxu1 %vm3445_vm2, %v4307_v5 }
  0xd7   :  { %2858 = vmatpush3.bf16.msk.msra.mxu0 %vm3435_vm0, %v4307_v5  ;;  %3050 = vmatpush3.bf16.msk.msra.mxu1 %vm3445_vm2, %v4307_v5 }
  0xd8   :  { %2860 = vmatprep.subr.msk.bf16.mxu0 %vm3481_vm14, %v4307_v5  ;;  %3052 = vmatprep.subr.msk.bf16.mxu1 %vm3493_vm7, %v4307_v5 }
  0xdb   :  { %2862 = vmatpush3.bf16.msk.msra.mxu0 %vm3481_vm14, %v4307_v5  ;;  %3054 = vmatpush3.bf16.msk.msra.mxu1 %vm3493_vm7, %v4307_v5 }
  0xdc   :  { %2864 = vmatprep.subr.msk.bf16.mxu0 %vm3548_vm12, %v4307_v5  ;;  %3056 = vmatprep.subr.msk.bf16.mxu1 %vm3563_vm13, %v4307_v5 }
  0xdf   :  { %2866 = vmatpush3.bf16.msk.msra.mxu0 %vm3548_vm12, %v4307_v5  ;;  %3058 = vmatpush3.bf16.msk.msra.mxu1 %vm3563_vm13, %v4307_v5 }
  0xe2   :  { %2442 = vmatmul.mubr.f32.vlgmr.msra.gmra.mrb[0].mxu0 %v3555_v58  ;;  %2670 = vmatmul.mubr.f32.vlgmr.msra.gmra.mrb[0].mxu1 %v3555_v58 }
  0xe3   :  { %2444 = vmatprep.mubr.f32.mxu0 %v3700_v18  ;;  %2672 = vmatprep.mubr.f32.mxu1 %v3700_v18 }
  0xe6   :  { %2445 = vmatmul.mubr.f32.gmra.mrb[2].mxu0 %v3724_v20  ;;  %2673 = vmatmul.mubr.f32.gmra.mrb[2].mxu1 %v3724_v20 }
 0x1b5   :  { %v2443_v21 = vpop.f32.mrb[0].mxu0  ;;  %v2671_v27 = vpop.f32.mrb[0].mxu1 }
 0x1b6   :  { %v1737_v33 = vmul.f32 %v2443_v21, %v2443_v21  ;;  %v1724_v38 = vmul.f32 %v2671_v27, %v2443_v21  ;;  %v1750_v43 = vmul.f32 %v2671_v27, %v2671_v27  ;;  %v931_v62 = vpop.f32.mrb[1].mxu0  ;;  %v1701_v3 = vpop.f32.mrb[1].mxu1 }
 0x1b7   :  { %v1736_v52 = vmul.f32 %v931_v62, %v931_v62  ;;  %v1723_v2 = vmul.f32 %v1701_v3, %v931_v62  ;;  %v1749_v24 = vmul.f32 %v1701_v3, %v1701_v3 }
 0x1b9   :  { %v1740_v1 = vadd.f32 %v1737_v33, %v1736_v52  ;;  %v1727_v58 = vadd.f32 %v1724_v38, %v1723_v2  ;;  %v1753_v51 = vadd.f32 %v1750_v43, %v1749_v24  ;;  %v2446_v30 = vpop.f32.mrb[2].mxu0  ;;  %v2674_v47 = vpop.f32.mrb[2].mxu1 }
 0x1ba   :  { %v1726_v18 = vmul.f32 %v2674_v47, %v2446_v30  ;;  %v943_v59 = vpop.f32.mrb[3].mxu0  ;;  %v1713_v14 = vpop.f32.mrb[3].mxu1  ;;  %v1739_v8 = vmul.f32 %v2446_v30, %v2446_v30  ;;  %v1752_v16 = vmul.f32 %v2674_v47, %v2674_v47 }
 0x1bb   :  { %v1738_v0 = vmul.f32 %v943_v59, %v943_v59  ;;  %v1725_v20 = vmul.f32 %v1713_v14, %v943_v59  ;;  %v1751_v36 = vmul.f32 %v1713_v14, %v1713_v14 }
 0x1bd   :  { %v1741_v63 = vadd.f32 %v1740_v1, %v1738_v0  ;;  %v1728_v28 = vadd.f32 %v1727_v58, %v1725_v20  ;;  %v1754_v39 = vadd.f32 %v1753_v51, %v1751_v36 }
 0x1bf   :  { %v1742_v40 = vadd.f32 %v1741_v63, %v1739_v8  ;;  %v1729_v11 = vadd.f32 %v1728_v28, %v1726_v18  ;;  %v1755_v48 = vadd.f32 %v1754_v39, %v1752_v16 }
 0x1c1   :  { %v1743_v25 = vrot.slane %v1742_v40, 4  ;;  %v1756_v26 = vrot.slane %v1755_v48, 4  ;;  %v1730_v19 = vrot.slane %v1729_v11, 4 }
 0x1c3   :  { %v1744_v29 = vadd.f32 %v1743_v25, %v1742_v40  ;;  %v1757_v35 = vadd.f32 %v1756_v26, %v1755_v48  ;;  %v1731_v49 = vadd.f32 %v1730_v19, %v1729_v11 }
 0x1c5   :  { %v1745_v54 = vrot.slane %v1744_v29, 2  ;;  %v1758_v55 = vrot.slane %v1757_v35, 2  ;;  %v1732_v60 = vrot.slane %v1731_v49, 2 }
 0x1c7   :  { %v1746_v15 = vadd.f32 %v1745_v54, %v1744_v29  ;;  %v1759_v12 = vadd.f32 %v1758_v55, %v1757_v35  ;;  %v1733_v4 = vadd.f32 %v1732_v60, %v1731_v49 }
 0x1c9   :  { %v1747_v45 = vrot.slane %v1746_v15, 1  ;;  %v1760_v46 = vrot.slane %v1759_v12, 1  ;;  %v1734_v5 = vrot.slane %v1733_v4, 1 }
 0x1cb   :  { %v1748_v50 = vadd.f32 %v1747_v45, %v1746_v15  ;;  %v1761_v56 = vadd.f32 %v1760_v46, %v1759_v12  ;;  %v1735_v9 = vadd.f32 %v1734_v5, %v1733_v4 }
 0x1cd   :  { %v1762_v57 = vmul.f32 %v1761_v56, %v1748_v50 }
 0x1cf   :  { %v1763_v61 = vmax.f32 %v1762_v57, 1e-16 }
 0x1d1   :  { %3109 = vrsqrt.f32 %v1763_v61 }
 0x1da   :  { %1777 = sbr.rel (%p1976_p8) target bundleno = 691 (0x2b3), region = 29 }
 0x1db   :  { %v3110_v10 = vpop.eup %3109 }
 0x1dc   :  { %v1765_v23 = vmul.f32 %v3110_v10, %v1735_v9 }
 0x1de   :  { %v1768_v13 = vsub.f32 %v1767_v22, %v1765_v23 }
 0x1e0   :  { %v1769_v34 = vmax.f32 %v1768_v13, 0.0 }
 0x1e2   :  { %v1780_v42 = vsel %vm1779_vm4, %v1769_v34, 0.0 }
 0x1e3   :  { %1781 = vadd.xlane.f32.xlu0 %v1780_v42 }
 0x270   :  { %v1782_v44 = vpop.xlane.xlu0 %1781 }
 0x271   :  { %v1783_v17 = vrot.slane %v1782_v44, 4 }
 0x273   :  { %v1784_v53 = vadd.f32 %v1783_v17, %v1782_v44 }
 0x275   :  { %v1785_v6 = vrot.slane %v1784_v53, 2 }
 0x277   :  { %v1786_v7 = vadd.f32 %v1785_v6, %v1784_v53 }
 0x279   :  { %v1787_v31 = vrot.slane %v1786_v7, 1 }
 0x27b   :  { %v1788_v32 = vadd.f32 %v1787_v31, %v1786_v7 }
 0x27d   :  { %3099 = vpush %v1788_v32 }
 0x2ae   :  { %s3100_s0 = spop %3099 }
 0x2af   :  { %v1790_v41 = vstv %s3100_s0 }
 0x2b0   :  { %v1791_v21 = vadd.f32 %v1790_v41, %v1778_v37 }
 0x2b2   :  { %1792 = vst [vmem:[#allocation2] sm:$0xff] %v1791_v21 }
 0x2b3 PF:  { %p1978_p9 = scmp.ge.s32.totalorder %s4152_s1, 128 }
 0x2b4   :  { %v4328_v27 = vlaneseq (!%p1978_p9)  ;;  %v1802_v38 = vstv (!%p1978_p9), %s4152_s1  ;;  %vm1805_vm5 = vcmask (!%p1978_p9), 1040384  }
 0x2b5   :  { %1796 = sbr.rel (%p1978_p9) target bundleno = 907 (0x38b), region = 33 }
 0x2b6   :  { %v1798_v33 = vand.u32 (!%p1978_p9), 127, %v4328_v27 }
 0x2b8   :  { %vm1803_vm9 = vcmp.lt.s32.totalorder (!%p1978_p9), %v1798_v33, %v1802_v38 }
 0x2b9   :  { %v1804_v43 = vsel (!%p1978_p9), %vm1803_vm9, %v1769_v34, 0.0  ;;  %v1801_v30 = vld [vmem:[#allocation2] sm:$0xff] (!%p1978_p9) }
 0x2ba   :  { %v1806_v62 = vsel (!%p1978_p9), %vm1805_vm5, %v1804_v43, 0.0 }
 0x2bb   :  { %1807 = vadd.xlane.f32.xlu0 (!%p1978_p9), %v1806_v62 }
 0x348   :  { %v1808_v3 = vpop.xlane.xlu0 %1807 }
 0x349   :  { %v1809_v52 = vrot.slane %v1808_v3, 4 }
 0x34b   :  { %v1810_v2 = vadd.f32 %v1809_v52, %v1808_v3 }
 0x34d   :  { %v1811_v24 = vrot.slane %v1810_v2, 2 }
 0x34f   :  { %v1812_v1 = vadd.f32 %v1811_v24, %v1810_v2 }
 0x351   :  { %v1813_v58 = vrot.slane %v1812_v1, 1 }
 0x353   :  { %v1814_v51 = vadd.f32 %v1813_v58, %v1812_v1 }
 0x355   :  { %3101 = vpush %v1814_v51 }
 0x386   :  { %s3102_s13 = spop %3101 }
 0x387   :  { %v1816_v47 = vstv %s3102_s13 }
 0x388   :  { %v1817_v18 = vadd.f32 %v1816_v47, %v1801_v30 }
 0x38a   :  { %1818 = vst [vmem:[#allocation2] sm:$0xff] %v1817_v18 }
 0x38b PF:  { %s3164_s1 = smov [#allocation8]  }
 0x38c   :  { %s1830_s14 = sshll.u32 %s3164_s1, 4  ;;  %s1831_s14 = int_to_ptr.vmem [resolvable:$true] %s1830_s14 }
 0x38d   :  { %s3133_s15 = scalar_lea.vmem %s1831_s14, 128  ;;  %p3138_p11 = scmp.lt.s32.totalorder %s1831_s14, %s1831_s14 }
 0x38e   :  { %p3134_p10 = scmp.ne.s32.totalorder %s1831_s14, %s3133_s15  ;;  %p3139_p12 = scmp.lt.s32.totalorder %s3133_s15, %s3133_s15 }
 0x390   :  { %p3140_p13 = por %p3139_p12, %p3138_p11 }
 0x391   :  { %v1822_v59 = vld [vmem:[#allocation2] sm:$0xff] }
 0x392   :  { %1823 = vst [vmem:[#allocation8] sm:$0xff] %v1822_v59  ;;  %p3141_p0 = pnand %p3140_p13, %p3134_p10 }
 0x394   :  { %3144 = shalt.err (!%p3141_p0)
}
 0x395   :  { %s3145_s18 = scalar_lea.hbm %s4155_s4, 128 }
 0x396   :  { %p3146_p1 = scmp.ne.s32.totalorder %s4155_s4, %s3145_s18  ;;  %p3149_p2 = scmp.lt.u32.totalorder %s3145_s18, %s4155_s4 }
 0x398   :  { %p3151_p3 = pnand %p3149_p2, %p3146_p1 }
 0x39a   :  { %3154 = shalt.err (!%p3151_p3)
}
 0x39b   :  { %1833 = dma.vmem_to_hbm [thread:$0]  %s1831_s14, 128, %s4155_s4, [#allocation7]  }
 0x39c   :  { %3157 = dma.done.wait [#allocation7], 128  }
 0x39d   :  { %3158 = vsyncadd [#allocation7], 4294967168 }
 0x39e   :  { %1837 = vsyncpa [#allocation6], 1 }
 0x39f   :  { %1838 = vsyncpa [#allocation7], 1 }

</bundles_post_ra>
